<compile_context>
chip_gen: v7x
topology: tpu7x:2x2x1
jax: 0.10.0
libtpu: 0.0.40
codegen_flags: <defaults>
</compile_context>

<pallas_src>
import functools

import jax
import jax.numpy as jnp
from jax.experimental import pallas as pl
from jax.experimental.pallas import tpu as pltpu


# ----------------------------- config (scaled down) -------------------------
POOLING_SIZE = 7          # cfg.POOLING_SIZE
SPATIAL_SCALE = 1.0 / 16.0
N_CLASSES = 8             # len(classes)
C_FEAT = 32               # base-feature channels (512 in real vgg16)
HIDDEN = 256              # vgg16 classifier hidden (4096 in real vgg16)
D_IN = C_FEAT * POOLING_SIZE * POOLING_SIZE   # flattened pool5
BBOX_DIM = 4 * N_CLASSES  # class_agnostic=False


# ----------------------------- RoI Align (glue, plain JAX) ------------------
# TODO(synk): RoIAlignAvg's legacy crop+avgpool variant is approximated by
# single bilinear sampling at bin centers (sampling_ratio=1); data-dependent
# gather has no clean BlockSpec expression, so it stays in plain JAX (but now
# gathers only the 4 corner taps per bin instead of whole feature-map copies).
def roi_align(base_feat, rois, pooled_size, spatial_scale):
    """base_feat: (B, C, H, W); rois: (N, 5) [batch_idx, x1, y1, x2, y2]."""
    B, C, H, W = base_feat.shape
    N = rois.shape[0]
    P = pooled_size

    # One C-vector per (b, y, x) so corner samples are simple row gathers.
    feat_rows = jnp.transpose(base_feat, (0, 2, 3, 1)).reshape(B * H * W, C)

    batch_idx = rois[:, 0].astype(jnp.int32)
    x1 = rois[:, 1] * spatial_scale
    y1 = rois[:, 2] * spatial_scale
    x2 = rois[:, 3] * spatial_scale
    y2 = rois[:, 4] * spatial_scale
    roi_w = jnp.maximum(x2 - x1, 1.0)
    roi_h = jnp.maximum(y2 - y1, 1.0)
    bin_w = roi_w / P
    bin_h = roi_h / P

    grid = jnp.arange(P, dtype=jnp.float32) + 0.5   # bin centers
    sy = y1[:, None] + grid[None, :] * bin_h[:, None]          # (N, P)
    sx = x1[:, None] + grid[None, :] * bin_w[:, None]          # (N, P)

    y0f = jnp.clip(jnp.floor(sy), 0.0, H - 1)
    x0f = jnp.clip(jnp.floor(sx), 0.0, W - 1)
    y1f = jnp.clip(y0f + 1.0, 0.0, H - 1)
    x1f = jnp.clip(x0f + 1.0, 0.0, W - 1)
    ly = jnp.clip(sy - y0f, 0.0, 1.0)
    lx = jnp.clip(sx - x0f, 0.0, 1.0)
    y0i, y1i = y0f.astype(jnp.int32), y1f.astype(jnp.int32)
    x0i, x1i = x0f.astype(jnp.int32), x1f.astype(jnp.int32)

    base = batch_idx[:, None, None] * (H * W)                  # (N, 1, 1)

    def gather(yi, xi):
        idx = base + yi[:, :, None] * W + xi[:, None, :]       # (N, P, P)
        g = jnp.take(feat_rows, idx.reshape(-1), axis=0)       # (N*P*P, C)
        return g.reshape(N, P, P, C)

    f00 = gather(y0i, x0i)
    f01 = gather(y0i, x1i)
    f10 = gather(y1i, x0i)
    f11 = gather(y1i, x1i)

    wy = ly[:, :, None, None]   # interp along y  (N, P, 1, 1)
    wx = lx[:, None, :, None]   # interp along x  (N, 1, P, 1)
    out = (f00 * (1 - wy) * (1 - wx) + f01 * (1 - wy) * wx
           + f10 * wy * (1 - wx) + f11 * wy * wx)              # (N, P, P, C)
    return jnp.transpose(out, (0, 3, 1, 2))                    # (N, C, P, P)


# ----------------------------- Pallas fused head kernel ---------------------
def head_kernel(x_ref, w1_ref, b1_ref, w2_ref, b2_ref, wh_ref, bh_ref,
                out_ref, acc_ref, *, n_classes):
    k = pl.program_id(1)

    @pl.when(k == 0)
    def _():
        acc_ref[...] = jnp.zeros_like(acc_ref)

    # fc6 partial K accumulation (bf16 operands, f32 accumulate).
    acc_ref[...] += jnp.dot(x_ref[...], w1_ref[...],
                            preferred_element_type=jnp.float32)

    @pl.when(k == pl.num_programs(1) - 1)
    def _():
        # fc6 epilogue + ReLU (Dropout is identity in eval mode)
        h1 = jnp.maximum(acc_ref[...] + b1_ref[...], 0.0)
        # fc7 + ReLU
        h2 = jnp.dot(h1.astype(jnp.bfloat16), w2_ref[...],
                     preferred_element_type=jnp.float32) + b2_ref[...]
        h2 = jnp.maximum(h2, 0.0)
        # fused [cls_score | bbox_pred | zero-pad] head, 128-lane dense output
        head = jnp.dot(h2.astype(jnp.bfloat16), wh_ref[...],
                       preferred_element_type=jnp.float32) + bh_ref[...]
        # softmax over the first n_classes lanes only
        col = jax.lax.broadcasted_iota(jnp.int32, head.shape, 1)
        cls_mask = col < n_classes
        masked = jnp.where(cls_mask, head, -jnp.inf)
        m = jnp.max(masked, axis=-1, keepdims=True)
        e = jnp.exp(masked - m)
        denom = jnp.sum(e, axis=-1, keepdims=True)
        probs = e * pl.reciprocal(denom, approx=True)
        out_ref[...] = jnp.where(cls_mask, probs, head)


def _pick_tk(d_pad, max_tk=2048):
    """Largest multiple-of-128 K tile <= max_tk that divides d_pad."""
    if d_pad <= max_tk:
        return d_pad
    for t in range(max_tk, 0, -128):
        if d_pad % t == 0:
            return t
    return 128


@jax.jit
def rcnn_head(pool5_flat, w1, b1, w2, b2, wc, bc, wb, bb):
    n, d_in = pool5_flat.shape
    hidden = w1.shape[1]
    nc = wc.shape[1]
    bd = wb.shape[1]

    # Pad the fc6 reduction (K) dim to a multiple of 128: full MXU edge tiles.
    d_pad = ((d_in + 127) // 128) * 128
    if d_pad != d_in:
        pool5_flat = jnp.pad(pool5_flat, ((0, 0), (0, d_pad - d_in)))
        w1 = jnp.pad(w1, ((0, d_pad - d_in), (0, 0)))

    # Fuse cls + bbox heads into one matmul with a lane-dense (>=128) output.
    out_w = nc + bd
    out_pad = max(128, ((out_w + 127) // 128) * 128)
    wh = jnp.pad(jnp.concatenate([wc, wb], axis=1), ((0, 0), (0, out_pad - out_w)))
    bh = jnp.pad(jnp.concatenate([bc, bb], axis=1), ((0, 0), (0, out_pad - out_w)))

    # bf16 matmul operands, f32 accumulation / bias / softmax.
    x_bf = pool5_flat.astype(jnp.bfloat16)
    w1_bf = w1.astype(jnp.bfloat16)
    w2_bf = w2.astype(jnp.bfloat16)
    wh_bf = wh.astype(jnp.bfloat16)

    tile_n = min(128, n)          # big row tiles; grid of 1 at small roi counts
    tk = _pick_tk(d_pad)          # fc6 K streaming tile (1 step at toy scale)
    grid = (pl.cdiv(n, tile_n), d_pad // tk)

    head_out = pl.pallas_call(
        functools.partial(head_kernel, n_classes=nc),
        out_shape=jax.ShapeDtypeStruct((n, out_pad), jnp.float32),
        grid_spec=pltpu.PrefetchScalarGridSpec(
            num_scalar_prefetch=0,
            grid=grid,
            in_specs=[
                pl.BlockSpec((tile_n, tk), lambda i, k: (i, k)),     # x
                pl.BlockSpec((tk, hidden), lambda i, k: (k, 0)),     # w_fc6
                pl.BlockSpec((1, hidden), lambda i, k: (0, 0)),      # b_fc6
                pl.BlockSpec((hidden, hidden), lambda i, k: (0, 0)), # w_fc7
                pl.BlockSpec((1, hidden), lambda i, k: (0, 0)),      # b_fc7
                pl.BlockSpec((hidden, out_pad), lambda i, k: (0, 0)),# w_head
                pl.BlockSpec((1, out_pad), lambda i, k: (0, 0)),     # b_head
            ],
            out_specs=pl.BlockSpec((tile_n, out_pad), lambda i, k: (i, 0)),
            scratch_shapes=[pltpu.VMEM((tile_n, hidden), jnp.float32)],
        ),
        compiler_params=pltpu.CompilerParams(
            dimension_semantics=("parallel", "arbitrary"),
            vmem_limit_bytes=64 * 1024 * 1024),
    )(x_bf, w1_bf, b1, w2_bf, b2, wh_bf, bh)

    cls_prob = head_out[:, :nc]
    bbox_pred = head_out[:, nc:nc + bd]
    return cls_prob, bbox_pred


# ----------------------------- detector forward (eval) ----------------------
def detector_forward(params, base_feat, rois, batch_size):
    """Eval-mode forward of `_detector` (vgg16, 'align' pooling)."""
    n_rois_per_img = rois.shape[1]
    rois_flat = rois.reshape(-1, 5)

    # RoI align -> (B*R, C, P, P)
    pooled_feat = roi_align(base_feat, rois_flat, POOLING_SIZE, SPATIAL_SCALE)
    # _head_to_tail_vgg16: flatten (NCHW order) then vgg classifier[:-1]
    pool5_flat = pooled_feat.reshape(pooled_feat.shape[0], -1)

    cls_prob, bbox_pred = rcnn_head(
        pool5_flat,
        params["w_fc6"], params["b_fc6"],
        params["w_fc7"], params["b_fc7"],
        params["w_cls"], params["b_cls"],
        params["w_bbox"], params["b_bbox"],
    )

    cls_prob = cls_prob.reshape(batch_size, n_rois_per_img, -1)
    bbox_pred = bbox_pred.reshape(batch_size, n_rois_per_img, -1)
    RCNN_loss_cls = 0
    RCNN_loss_bbox = 0
    rois_label = None
    return rois, cls_prob, bbox_pred, RCNN_loss_cls, RCNN_loss_bbox, rois_label


# ----------------------------- deterministic params -------------------------
def init_params(key):
    ks = jax.random.split(key, 8)
    return {
        "w_fc6": 0.01 * jax.random.normal(ks[0], (D_IN, HIDDEN), jnp.float32),
        "b_fc6": 0.01 * jax.random.normal(ks[1], (1, HIDDEN), jnp.float32),
        "w_fc7": 0.01 * jax.random.normal(ks[2], (HIDDEN, HIDDEN), jnp.float32),
        "b_fc7": 0.01 * jax.random.normal(ks[3], (1, HIDDEN), jnp.float32),
        "w_cls": 0.01 * jax.random.normal(ks[4], (HIDDEN, N_CLASSES), jnp.float32),
        "b_cls": 0.01 * jax.random.normal(ks[5], (1, N_CLASSES), jnp.float32),
        "w_bbox": 0.001 * jax.random.normal(ks[6], (HIDDEN, BBOX_DIM), jnp.float32),
        "b_bbox": 0.001 * jax.random.normal(ks[7], (1, BBOX_DIM), jnp.float32),
    }


if __name__ == "__main__":
    key = jax.random.PRNGKey(0)
    k_param, k_feat, k_roi1, k_roi2 = jax.random.split(key, 4)

    params = init_params(k_param)

    # base_feat: NCHW (B, C, H, W); feature-map stride 16 -> image is 256x256.
    B, H, W = 2, 16, 16
    R = 16  # rois per image
    base_feat = jax.random.normal(k_feat, (B, C_FEAT, H, W), jnp.float32)

    # rois: (B, R, 5) = [batch_idx, x1, y1, x2, y2] in image coordinates.
    img_size = H * 16
    xy1 = jax.random.uniform(k_roi1, (B, R, 2), minval=0.0, maxval=img_size * 0.5)
    wh = jax.random.uniform(k_roi2, (B, R, 2), minval=32.0, maxval=img_size * 0.5)
    xy2 = jnp.clip(xy1 + wh, 0.0, img_size - 1.0)
    bidx = jnp.broadcast_to(
        jnp.arange(B, dtype=jnp.float32)[:, None, None], (B, R, 1))
    rois = jnp.concatenate([bidx, xy1, xy2], axis=-1)

    out = detector_forward(params, base_feat, rois, B)
    rois_out, cls_prob, bbox_pred, loss_cls, loss_bbox, rois_label = out
    jax.block_until_ready(cls_prob)
    jax.block_until_ready(bbox_pred)

    assert cls_prob.shape == (B, R, N_CLASSES)
    assert bbox_pred.shape == (B, R, BBOX_DIM)
    # softmax rows must sum to ~1 (approx reciprocal + bf16 matmuls)
    assert jnp.allclose(jnp.sum(cls_prob, axis=-1), 1.0, atol=5e-3)
    print("KERNEL_OK")
</pallas_src>

<mosaic_0001>
module attributes {stable_mosaic.version = 11 : i64} {
  func.func @head_kernel(%arg0: i32, %arg1: i32, %arg2: memref<32x1664xbf16, #tpu.memory_space<vmem>>, %arg3: memref<1664x256xbf16, #tpu.memory_space<vmem>>, %arg4: memref<1x256xf32, #tpu.memory_space<vmem>>, %arg5: memref<256x256xbf16, #tpu.memory_space<vmem>>, %arg6: memref<1x256xf32, #tpu.memory_space<vmem>>, %arg7: memref<256x128xbf16, #tpu.memory_space<vmem>>, %arg8: memref<1x128xf32, #tpu.memory_space<vmem>>, %arg9: memref<32x128xf32, #tpu.memory_space<vmem>>, %arg10: memref<32x256xf32, #tpu.memory_space<vmem>>) attributes {dimension_semantics = [#tpu.dimension_semantics<parallel>, #tpu.dimension_semantics<arbitrary>], iteration_bounds = array<i64: 1, 1>, scalar_prefetch = 0 : i64, scratch_operands = 1 : i64, tpu.core_type = #tpu.core_type<tc>, window_params = [{transform_indices = @transform_0, window_bounds = array<i64: 32, 1664>}, {transform_indices = @transform_1, window_bounds = array<i64: 1664, 256>}, {pipeline_mode = #tpu.pipeline_mode<synchronous>, transform_indices = @transform_2, window_bounds = array<i64: 1, 256>}, {pipeline_mode = #tpu.pipeline_mode<synchronous>, transform_indices = @transform_3, window_bounds = array<i64: 256, 256>}, {pipeline_mode = #tpu.pipeline_mode<synchronous>, transform_indices = @transform_4, window_bounds = array<i64: 1, 256>}, {pipeline_mode = #tpu.pipeline_mode<synchronous>, transform_indices = @transform_5, window_bounds = array<i64: 256, 128>}, {pipeline_mode = #tpu.pipeline_mode<synchronous>, transform_indices = @transform_6, window_bounds = array<i64: 1, 128>}, {transform_indices = @transform_7, window_bounds = array<i64: 32, 128>}]} {
    %c0_i32 = arith.constant 0 : i32
    %0 = arith.cmpi eq, %arg1, %c0_i32 : i32
    %1 = arith.extui %0 : i1 to i32
    %c0_i32_0 = arith.constant 0 : i32
    %2 = arith.cmpi ne, %1, %c0_i32_0 : i32
    scf.if %2 {
      %cst_10 = arith.constant 0.000000e+00 : f32
      %12 = vector.broadcast %cst_10 : f32 to vector<32x256xf32>
      %c0_11 = arith.constant 0 : index
      %c0_12 = arith.constant 0 : index
      %13 = vector.load %arg10[%c0_11, %c0_12] : memref<32x256xf32, #tpu.memory_space<vmem>>, vector<32x256xf32>
      tpu.vector_store %arg10[%c0_11, %c0_12], %12 {strides = array<i32>} : memref<32x256xf32, #tpu.memory_space<vmem>>, vector<32x256xf32>,
    } else {
    }
    %c0 = arith.constant 0 : index
    %c0_1 = arith.constant 0 : index
    %3 = vector.load %arg10[%c0, %c0_1] : memref<32x256xf32, #tpu.memory_space<vmem>>, vector<32x256xf32>
    %c0_2 = arith.constant 0 : index
    %c0_3 = arith.constant 0 : index
    %4 = vector.load %arg2[%c0_2, %c0_3] : memref<32x1664xbf16, #tpu.memory_space<vmem>>, vector<32x1664xbf16>
    %c0_4 = arith.constant 0 : index
    %c0_5 = arith.constant 0 : index
    %5 = vector.load %arg3[%c0_4, %c0_5] : memref<1664x256xbf16, #tpu.memory_space<vmem>>, vector<1664x256xbf16>
    %cst = arith.constant dense<0.000000e+00> : vector<32x256xf32>
    %6 = tpu.matmul %4, %5, %cst {dimension_numbers = #tpu.dot_dimension_numbers<[1], [0], [0], [1], [0, 0, 1, 1], [], []>} : vector<32x1664xbf16>, vector<1664x256xbf16>, vector<32x256xf32> -> vector<32x256xf32>
    %7 = arith.addf %3, %6 : vector<32x256xf32>
    %c0_6 = arith.constant 0 : index
    %c0_7 = arith.constant 0 : index
    %8 = vector.load %arg10[%c0_6, %c0_7] : memref<32x256xf32, #tpu.memory_space<vmem>>, vector<32x256xf32>
    tpu.vector_store %arg10[%c0_6, %c0_7], %7 {strides = array<i32>} : memref<32x256xf32, #tpu.memory_space<vmem>>, vector<32x256xf32>,
    %c0_i32_8 = arith.constant 0 : i32
    %9 = arith.cmpi eq, %arg1, %c0_i32_8 : i32
    %10 = arith.extui %9 : i1 to i32
    %c0_i32_9 = arith.constant 0 : i32
    %11 = arith.cmpi ne, %10, %c0_i32_9 : i32
    scf.if %11 {
      %c0_10 = arith.constant 0 : index
      %c0_11 = arith.constant 0 : index
      %12 = vector.load %arg10[%c0_10, %c0_11] : memref<32x256xf32, #tpu.memory_space<vmem>>, vector<32x256xf32>
      %c0_12 = arith.constant 0 : index
      %c0_13 = arith.constant 0 : index
      %13 = vector.load %arg4[%c0_12, %c0_13] : memref<1x256xf32, #tpu.memory_space<vmem>>, vector<1x256xf32>
      %14 = vector.broadcast %13 : vector<1x256xf32> to vector<32x256xf32>
      %15 = arith.addf %12, %14 : vector<32x256xf32>
      %cst_14 = arith.constant 0.000000e+00 : f32
      %16 = vector.broadcast %cst_14 : f32 to vector<32x256xf32>
      %17 = arith.maximumf %15, %16 : vector<32x256xf32>
      %18 = arith.truncf %17 : vector<32x256xf32> to vector<32x256xbf16>
      %c0_15 = arith.constant 0 : index
      %c0_16 = arith.constant 0 : index
      %19 = vector.load %arg5[%c0_15, %c0_16] : memref<256x256xbf16, #tpu.memory_space<vmem>>, vector<256x256xbf16>
      %cst_17 = arith.constant dense<0.000000e+00> : vector<32x256xf32>
      %20 = tpu.matmul %18, %19, %cst_17 {dimension_numbers = #tpu.dot_dimension_numbers<[1], [0], [0], [1], [0, 0, 1, 1], [], []>} : vector<32x256xbf16>, vector<256x256xbf16>, vector<32x256xf32> -> vector<32x256xf32>
      %c0_18 = arith.constant 0 : index
      %c0_19 = arith.constant 0 : index
      %21 = vector.load %arg6[%c0_18, %c0_19] : memref<1x256xf32, #tpu.memory_space<vmem>>, vector<1x256xf32>
      %22 = vector.broadcast %21 : vector<1x256xf32> to vector<32x256xf32>
      %23 = arith.addf %20, %22 : vector<32x256xf32>
      %cst_20 = arith.constant 0.000000e+00 : f32
      %24 = vector.broadcast %cst_20 : f32 to vector<32x256xf32>
      %25 = arith.maximumf %23, %24 : vector<32x256xf32>
      %26 = arith.truncf %25 : vector<32x256xf32> to vector<32x256xbf16>
      %c0_21 = arith.constant 0 : index
      %c0_22 = arith.constant 0 : index
      %27 = vector.load %arg7[%c0_21, %c0_22] : memref<256x128xbf16, #tpu.memory_space<vmem>>, vector<256x128xbf16>
      %cst_23 = arith.constant dense<0.000000e+00> : vector<32x128xf32>
      %28 = tpu.matmul %26, %27, %cst_23 {dimension_numbers = #tpu.dot_dimension_numbers<[1], [0], [0], [1], [0, 0, 1, 1], [], []>} : vector<32x256xbf16>, vector<256x128xbf16>, vector<32x128xf32> -> vector<32x128xf32>
      %c0_24 = arith.constant 0 : index
      %c0_25 = arith.constant 0 : index
      %29 = vector.load %arg8[%c0_24, %c0_25] : memref<1x128xf32, #tpu.memory_space<vmem>>, vector<1x128xf32>
      %30 = vector.broadcast %29 : vector<1x128xf32> to vector<32x128xf32>
      %31 = arith.addf %28, %30 : vector<32x128xf32>
      %32 = tpu.iota {dimensions = array<i32: 1>} : vector<32x128xi32>
      %c8_i32 = arith.constant 8 : i32
      %33 = vector.broadcast %c8_i32 : i32 to vector<32x128xi32>
      %34 = arith.cmpi slt, %32, %33 : vector<32x128xi32>
      %cst_26 = arith.constant 0xFF800000 : f32
      %35 = vector.broadcast %cst_26 : f32 to vector<32x128xf32>
      %36 = arith.select %34, %31, %35 : vector<32x128xi1>, vector<32x128xf32>
      %cst_27 = arith.constant dense<0xFF800000> : vector<32xf32>
      %37 = vector.multi_reduction <maximumf>, %36, %cst_27 [1] : vector<32x128xf32> to vector<32xf32>
      %38 = vector.shape_cast %37 : vector<32xf32> to vector<32x1xf32>
      %39 = vector.broadcast %38 : vector<32x1xf32> to vector<32x128xf32>
      %40 = arith.subf %36, %39 : vector<32x128xf32>
      %41 = math.exp %40 : vector<32x128xf32>
      %cst_28 = arith.constant dense<0.000000e+00> : vector<32xf32>
      %42 = vector.multi_reduction <add>, %41, %cst_28 [1] : vector<32x128xf32> to vector<32xf32>
      %43 = vector.shape_cast %42 : vector<32xf32> to vector<32x1xf32>
      %44 = tpu.reciprocal %43 {approx = true} : vector<32x1xf32> -> vector<32x1xf32>
      %45 = vector.broadcast %44 : vector<32x1xf32> to vector<32x128xf32>
      %46 = arith.mulf %41, %45 : vector<32x128xf32>
      %47 = arith.select %34, %46, %31 : vector<32x128xi1>, vector<32x128xf32>
      %c0_29 = arith.constant 0 : index
      %c0_30 = arith.constant 0 : index
      %48 = vector.load %arg9[%c0_29, %c0_30] : memref<32x128xf32, #tpu.memory_space<vmem>>, vector<32x128xf32>
      tpu.vector_store %arg9[%c0_29, %c0_30], %47 {strides = array<i32>} : memref<32x128xf32, #tpu.memory_space<vmem>>, vector<32x128xf32>,
    } else {
    }
    return
  }
  func.func @transform_0(%arg0: i32, %arg1: i32) -> (i32, i32) {
    %c0_i32 = arith.constant 0 : i32
    return %arg0, %arg1 : i32, i32
  }
  func.func @transform_1(%arg0: i32, %arg1: i32) -> (i32, i32) {
    %c0_i32 = arith.constant 0 : i32
    %c0_i32_0 = arith.constant 0 : i32
    return %arg1, %c0_i32 : i32, i32
  }
  func.func @transform_2(%arg0: i32, %arg1: i32) -> (i32, i32) {
    %c0_i32 = arith.constant 0 : i32
    %c0_i32_0 = arith.constant 0 : i32
    %c0_i32_1 = arith.constant 0 : i32
    return %c0_i32, %c0_i32_0 : i32, i32
  }
  func.func @transform_3(%arg0: i32, %arg1: i32) -> (i32, i32) {
    %c0_i32 = arith.constant 0 : i32
    %c0_i32_0 = arith.constant 0 : i32
    %c0_i32_1 = arith.constant 0 : i32
    return %c0_i32, %c0_i32_0 : i32, i32
  }
  func.func @transform_4(%arg0: i32, %arg1: i32) -> (i32, i32) {
    %c0_i32 = arith.constant 0 : i32
    %c0_i32_0 = arith.constant 0 : i32
    %c0_i32_1 = arith.constant 0 : i32
    return %c0_i32, %c0_i32_0 : i32, i32
  }
  func.func @transform_5(%arg0: i32, %arg1: i32) -> (i32, i32) {
    %c0_i32 = arith.constant 0 : i32
    %c0_i32_0 = arith.constant 0 : i32
    %c0_i32_1 = arith.constant 0 : i32
    return %c0_i32, %c0_i32_0 : i32, i32
  }
  func.func @transform_6(%arg0: i32, %arg1: i32) -> (i32, i32) {
    %c0_i32 = arith.constant 0 : i32
    %c0_i32_0 = arith.constant 0 : i32
    %c0_i32_1 = arith.constant 0 : i32
    return %c0_i32, %c0_i32_0 : i32, i32
  }
  func.func @transform_7(%arg0: i32, %arg1: i32) -> (i32, i32) {
    %c0_i32 = arith.constant 0 : i32
    %c0_i32_0 = arith.constant 0 : i32
    return %arg0, %c0_i32 : i32, i32
  }
}

</mosaic_0001>

<bundles_post_ra>
// kernel: rcnn_head.1
= control target key start
LH: loop header
LB: loop body
LE: loop exit
PB: predicated region body
PF: predicated region fallthrough
CT: control target
= control target key end

     0   :  { %12 = vsyncpa [#allocation4], 0  ;;  %s3682_s0 = inlined_call_operand.hbm [shape: bf16[32,1664], index: 0, kind: input, shape index: {}]   ;;  %s3683_s1 = inlined_call_operand.hbm [shape: bf16[1664,256], index: 1, kind: input, shape index: {}]   ;;  %s3684_s2 = inlined_call_operand.hbm [shape: f32[1,256], index: 2, kind: input, shape index: {}]   ;;  %s3685_s3 = inlined_call_operand.hbm [shape: bf16[256,256], index: 3, kind: input, shape index: {}]   ;;  %s3686_s4 = inlined_call_operand.hbm [shape: f32[1,256], index: 4, kind: input, shape index: {}]   ;;  %s3687_s5 = inlined_call_operand.hbm [shape: bf16[256,128], index: 5, kind: input, shape index: {}]   ;;  %s3688_s6 = inlined_call_operand.hbm [shape: f32[1,128], index: 6, kind: input, shape index: {}]   ;;  %s3689_s7 = inlined_call_operand.hbm [shape: f32[32,128], index: 7, kind: output, shape index: {}]  }
   0x1   :  { %13 = vsyncpa [#allocation7], 0 }
   0x2   :  { %14 = vsyncpa [#allocation10], 0 }
   0x3   :  { %15 = vsyncpa [#allocation13], 0 }
   0x4   :  { %16 = vsyncpa [#allocation5], 0  ;;  %s3489_s24 = smov [#allocation6]   ;;  %s3303_s28 = scalar_lea.hbm %s3683_s1, 26624 }
   0x5   :  { %s34_s25 = sshll.u32 %s3489_s24, 4  ;;  %p3304_p0 = scmp.ne.s32.totalorder %s3683_s1, %s3303_s28  ;;  %s35_s25 = int_to_ptr.vmem [resolvable:$true] %s34_s25 }
   0x6   :  { %p3307_p1 = scmp.lt.u32.totalorder %s3303_s28, %s3683_s1 }
   0x8   :  { %p3309_p2 = pnand %p3307_p1, %p3304_p0 }
   0xa   :  { %3312 = shalt.err (!%p3309_p2)
}
   0xb   :  { %s3313_s10 = scalar_lea.vmem %s35_s25, 26624  ;;  %p3318_p4 = scmp.lt.s32.totalorder %s35_s25, %s35_s25 }
   0xc   :  { %p3314_p3 = scmp.ne.s32.totalorder %s35_s25, %s3313_s10  ;;  %p3319_p5 = scmp.lt.s32.totalorder %s3313_s10, %s3313_s10 }
   0xe   :  { %p3320_p6 = por %p3319_p5, %p3318_p4 }
  0x10   :  { %p3321_p7 = pnand %p3320_p6, %p3314_p3 }
  0x12   :  { %3324 = shalt.err (!%p3321_p7)
}
  0x13   :  { %s3490_s11 = smov 128   ;;  %s3491_s12 = smov 8  }
  0x14   :  { %40 = dma.hbm_to_vmem [thread:$0]  %s3683_s1, 26624, %s35_s25, [#allocation7], %s3490_s11, %s3490_s11, %s3491_s12  }
  0x15   :  { %s3492_s15 = smov [#allocation9]   ;;  %s3493_s17 = smov [#allocation12]  }
  0x16   :  { %s56_s16 = sshll.u32 %s3492_s15, 4  ;;  %s78_s18 = sshll.u32 %s3493_s17, 4  ;;  %s57_s16 = int_to_ptr.vmem [resolvable:$true] %s56_s16  ;;  %s79_s18 = int_to_ptr.vmem [resolvable:$true] %s78_s18 }
  0x17   :  { %s3325_s21 = scalar_lea.hbm %s3685_s3, 4096 }
  0x18   :  { %p3326_p8 = scmp.ne.s32.totalorder %s3685_s3, %s3325_s21  ;;  %p3329_p9 = scmp.lt.u32.totalorder %s3325_s21, %s3685_s3 }
  0x1a   :  { %p3331_p10 = pnand %p3329_p9, %p3326_p8 }
  0x1c   :  { %3334 = shalt.err (!%p3331_p10)
}
  0x1d   :  { %s3335_s1 = scalar_lea.vmem %s57_s16, 4096  ;;  %p3340_p12 = scmp.lt.s32.totalorder %s57_s16, %s57_s16 }
  0x1e   :  { %p3336_p11 = scmp.ne.s32.totalorder %s57_s16, %s3335_s1  ;;  %p3341_p13 = scmp.lt.s32.totalorder %s3335_s1, %s3335_s1 }
  0x20   :  { %p3342_p0 = por %p3341_p13, %p3340_p12 }
  0x22   :  { %p3343_p1 = pnand %p3342_p0, %p3336_p11 }
  0x24   :  { %3346 = shalt.err (!%p3343_p1)
}
  0x25   :  { %62 = dma.hbm_to_vmem [thread:$0]  %s3685_s3, 4096, %s57_s16, [#allocation10], %s3490_s11, %s3490_s11, %s3491_s12  }
  0x26   :  { %s3347_s30 = scalar_lea.hbm %s3687_s5, 2048 }
  0x27   :  { %p3348_p2 = scmp.ne.s32.totalorder %s3687_s5, %s3347_s30  ;;  %p3351_p3 = scmp.lt.u32.totalorder %s3347_s30, %s3687_s5 }
  0x29   :  { %p3353_p4 = pnand %p3351_p3, %p3348_p2 }
  0x2b   :  { %3356 = shalt.err (!%p3353_p4)
}
  0x2c   :  { %s3357_s14 = scalar_lea.vmem %s79_s18, 2048  ;;  %p3362_p6 = scmp.lt.s32.totalorder %s79_s18, %s79_s18 }
  0x2d   :  { %p3358_p5 = scmp.ne.s32.totalorder %s79_s18, %s3357_s14  ;;  %p3363_p7 = scmp.lt.s32.totalorder %s3357_s14, %s3357_s14 }
  0x2f   :  { %p3364_p8 = por %p3363_p7, %p3362_p6 }
  0x31   :  { %p3365_p9 = pnand %p3364_p8, %p3358_p5 }
  0x33   :  { %3368 = shalt.err (!%p3365_p9)
}
  0x34   :  { %s3494_s3 = smov 64   ;;  %s3495_s15 = smov 4  }
  0x35   :  { %84 = dma.hbm_to_vmem [thread:$0]  %s3687_s5, 2048, %s79_s18, [#allocation13], %s3494_s3, %s3494_s3, %s3495_s15  }
  0x36   :  { %s3496_s19 = smov [#allocation3]   ;;  %s3369_s23 = scalar_lea.hbm %s3682_s0, 3328 }
  0x37   :  { %s22_s20 = sshll.u32 %s3496_s19, 4  ;;  %p3370_p10 = scmp.ne.s32.totalorder %s3682_s0, %s3369_s23  ;;  %s23_s20 = int_to_ptr.vmem [resolvable:$true] %s22_s20 }
  0x38   :  { %p3373_p11 = scmp.lt.u32.totalorder %s3369_s23, %s3682_s0 }
  0x3a   :  { %p3375_p12 = pnand %p3373_p11, %p3370_p10 }
  0x3c   :  { %3378 = shalt.err (!%p3375_p12)
}
  0x3d   :  { %s3379_s27 = scalar_lea.vmem %s23_s20, 3328  ;;  %p3384_p0 = scmp.lt.s32.totalorder %s23_s20, %s23_s20 }
  0x3e   :  { %p3380_p13 = scmp.ne.s32.totalorder %s23_s20, %s3379_s27  ;;  %p3385_p1 = scmp.lt.s32.totalorder %s3379_s27, %s3379_s27 }
  0x40   :  { %p3386_p2 = por %p3385_p1, %p3384_p0 }
  0x42   :  { %p3387_p3 = pnand %p3386_p2, %p3380_p13 }
  0x44   :  { %3390 = shalt.err (!%p3387_p3)
}
  0x45   :  { %s3497_s5 = smov 832   ;;  %s3498_s18 = smov 52  }
  0x46   :  { %28 = dma.hbm_to_vmem [thread:$0]  %s3682_s0, 3328, %s23_s20, [#allocation4], %s3497_s5, %s3497_s5, %s3498_s18  }
  0x47   :  { %s3499_s30 = smov [#allocation8]   ;;  %s3500_s9 = smov [#allocation11]  }
  0x48   :  { %s47_s8 = sshll.u32 %s3499_s30, 4  ;;  %s69_s10 = sshll.u32 %s3500_s9, 4  ;;  %s48_s8 = int_to_ptr.vmem [resolvable:$true] %s47_s8  ;;  %s70_s10 = int_to_ptr.vmem [resolvable:$true] %s69_s10 }
  0x49   :  { %s3391_s3 = scalar_lea.hbm %s3684_s2, 32 }
  0x4a   :  { %p3392_p4 = scmp.ne.s32.totalorder %s3684_s2, %s3391_s3  ;;  %p3395_p5 = scmp.lt.u32.totalorder %s3391_s3, %s3684_s2 }
  0x4c   :  { %p3397_p6 = pnand %p3395_p5, %p3392_p4 }
  0x4e   :  { %3400 = shalt.err (!%p3397_p6)
}
  0x4f   :  { %s3401_s0 = scalar_lea.vmem %s48_s8, 32  ;;  %p3406_p8 = scmp.lt.s32.totalorder %s48_s8, %s48_s8 }
  0x50   :  { %p3402_p7 = scmp.ne.s32.totalorder %s48_s8, %s3401_s0  ;;  %p3407_p9 = scmp.lt.s32.totalorder %s3401_s0, %s3401_s0 }
  0x52   :  { %p3408_p10 = por %p3407_p9, %p3406_p8 }
  0x54   :  { %p3409_p11 = pnand %p3408_p10, %p3402_p7 }
  0x56   :  { %3412 = shalt.err (!%p3409_p11)
}
  0x57   :  { %50 = dma.hbm_to_vmem [thread:$0]  %s3684_s2, 32, %s48_s8, [#allocation7]  }
  0x58   :  { %s3413_s24 = scalar_lea.hbm %s3686_s4, 32 }
  0x59   :  { %p3414_p12 = scmp.ne.s32.totalorder %s3686_s4, %s3413_s24  ;;  %p3417_p13 = scmp.lt.u32.totalorder %s3413_s24, %s3686_s4 }
  0x5b   :  { %p3419_p0 = pnand %p3417_p13, %p3414_p12 }
  0x5d   :  { %3422 = shalt.err (!%p3419_p0)
}
  0x5e   :  { %s3423_s5 = scalar_lea.vmem %s70_s10, 32  ;;  %p3428_p2 = scmp.lt.s32.totalorder %s70_s10, %s70_s10 }
  0x5f   :  { %p3424_p1 = scmp.ne.s32.totalorder %s70_s10, %s3423_s5  ;;  %p3429_p3 = scmp.lt.s32.totalorder %s3423_s5, %s3423_s5 }
  0x61   :  { %p3430_p4 = por %p3429_p3, %p3428_p2 }
  0x63   :  { %p3431_p5 = pnand %p3430_p4, %p3424_p1 }
  0x65   :  { %3434 = shalt.err (!%p3431_p5)
}
  0x66   :  { %72 = dma.hbm_to_vmem [thread:$0]  %s3686_s4, 32, %s70_s10, [#allocation10]  }
  0x67   :  { %s3501_s28 = smov [#allocation14]   ;;  %s3435_s9 = scalar_lea.hbm %s3688_s6, 16 }
  0x68   :  { %s91_s29 = sshll.u32 %s3501_s28, 4  ;;  %p3436_p6 = scmp.ne.s32.totalorder %s3688_s6, %s3435_s9  ;;  %s92_s29 = int_to_ptr.vmem [resolvable:$true] %s91_s29 }
  0x69   :  { %p3439_p7 = scmp.lt.u32.totalorder %s3435_s9, %s3688_s6 }
  0x6b   :  { %p3441_p8 = pnand %p3439_p7, %p3436_p6 }
  0x6d   :  { %3444 = shalt.err (!%p3441_p8)
}
  0x6e   :  { %s3445_s16 = scalar_lea.vmem %s92_s29, 16  ;;  %s3449_s4 = scalar_lea.vmem %s92_s29, 32 }
  0x6f   :  { %p3446_p9 = scmp.ne.s32.totalorder %s92_s29, %s3445_s16  ;;  %p3450_p10 = scmp.lt.s32.totalorder %s92_s29, %s92_s29 }
  0x70   :  { %p3451_p11 = scmp.lt.s32.totalorder %s3449_s4, %s3445_s16 }
  0x72   :  { %p3452_p12 = por %p3451_p11, %p3450_p10 }
  0x74   :  { %p3453_p13 = pnand %p3452_p12, %p3446_p9 }
  0x76   :  { %3456 = shalt.err (!%p3453_p13)
}
  0x77   :  { %94 = dma.hbm_to_vmem [thread:$0]  %s3688_s6, 16, %s92_s29, [#allocation13]  }
  0x78   :  { %3479 = dma.done.wait [#allocation4], 3328  }
  0x79   :  { %3480 = vsyncadd [#allocation4], 4294963968 }
  0x7a   :  { %3481 = dma.done.wait [#allocation7], 26656  }
  0x7b   :  { %3482 = vsyncadd [#allocation7], 4294940640 }
  0x7c   :  { %3483 = dma.done.wait [#allocation10], 4128  }
  0x7d   :  { %3484 = vsyncadd [#allocation10], 4294963168 }
  0x7e   :  { %3485 = dma.done.wait [#allocation13], 2064  }
  0x7f   :  { %3486 = vsyncadd [#allocation13], 4294965232  ;;  %v2873_v0 = vld [vmem:[#allocation6 + $0x204] ss:$8 sps:$4 sm:$0xff]   ;;  %v2875_v1 = vld [vmem:[#allocation6 + $0x200] ss:$8 sps:$4 sm:$0xff]  }
  0x80   :  { %1651 = vmatprep.subr.bf16.mxu0 %v2873_v0  ;;  %v2876_v2 = vld [vmem:[#allocation6 + $0x214] ss:$8 sps:$4 sm:$0xff]   ;;  %v2878_v3 = vld [vmem:[#allocation6 + $0x210] ss:$8 sps:$4 sm:$0xff]   ;;  %v2879_v4 = vld [vmem:[#allocation6 + $0x224] ss:$8 sps:$4 sm:$0xff]  }
  0x81   :  { %1652 = vmatpush1.bf16.msra.mxu0 %v2875_v1  ;;  %v2881_v5 = vld [vmem:[#allocation6 + $0x220] ss:$8 sps:$4 sm:$0xff]   ;;  %v2882_v6 = vld [vmem:[#allocation6 + $0x234] ss:$8 sps:$4 sm:$0xff]   ;;  %v2884_v7 = vld [vmem:[#allocation6 + $0x230] ss:$8 sps:$4 sm:$0xff]  }
  0x82   :  { %1653 = vmatprep.subr.bf16.mxu0 %v2876_v2  ;;  %v2897_v8 = vld [vmem:[#allocation6 + $0x4] ss:$8 sps:$4 sm:$0xff]   ;;  %v2901_v10 = vld [vmem:[#allocation6] ss:$8 sps:$4 sm:$0xff]   ;;  %v2903_v11 = vld [vmem:[#allocation6 + $0x14] ss:$8 sps:$4 sm:$0xff]  }
  0x83   :  { %v2885_v9 = vld [vmem:[#allocation6 + $0x244] ss:$8 sps:$4 sm:$0xff]   ;;  %1545 = vmatprep.subr.bf16.mxu1 %v2897_v8  ;;  %v2887_v12 = vld [vmem:[#allocation6 + $0x240] ss:$8 sps:$4 sm:$0xff]   ;;  %v2888_v13 = vld [vmem:[#allocation6 + $0x254] ss:$8 sps:$4 sm:$0xff]  }
  0x84   :  { %1546 = vmatpush1.bf16.msra.mxu1 %v2901_v10  ;;  %v2907_v14 = vld [vmem:[#allocation6 + $0x10] ss:$8 sps:$4 sm:$0xff]   ;;  %v2909_v15 = vld [vmem:[#allocation6 + $0x24] ss:$8 sps:$4 sm:$0xff]   ;;  %v2913_v17 = vld [vmem:[#allocation6 + $0x20] ss:$8 sps:$4 sm:$0xff]  }
  0x85   :  { %1654 = vmatpush1.bf16.msra.mxu0 %v2878_v3  ;;  %1547 = vmatprep.subr.bf16.mxu1 %v2903_v11  ;;  %v2890_v16 = vld [vmem:[#allocation6 + $0x250] ss:$8 sps:$4 sm:$0xff]   ;;  %v2915_v18 = vld [vmem:[#allocation6 + $0x34] ss:$8 sps:$4 sm:$0xff]   ;;  %v2891_v19 = vld [vmem:[#allocation6 + $0x264] ss:$8 sps:$4 sm:$0xff]  }
  0x86   :  { %1655 = vmatprep.subr.bf16.mxu0 %v2879_v4  ;;  %v2919_v20 = vld [vmem:[#allocation6 + $0x30] ss:$8 sps:$4 sm:$0xff]   ;;  %v2893_v21 = vld [vmem:[#allocation6 + $0x260] ss:$8 sps:$4 sm:$0xff]   ;;  %v2921_v22 = vld [vmem:[#allocation6 + $0x44] ss:$8 sps:$4 sm:$0xff]  }
  0x87   :  { %v2894_v23 = vld [vmem:[#allocation6 + $0x274] ss:$8 sps:$4 sm:$0xff]   ;;  %v2896_v24 = vld [vmem:[#allocation6 + $0x270] ss:$8 sps:$4 sm:$0xff]   ;;  %v2925_v25 = vld [vmem:[#allocation6 + $0x40] ss:$8 sps:$4 sm:$0xff]  }
  0x88   :  { %1548 = vmatpush1.bf16.msra.mxu1 %v2907_v14  ;;  %v2927_v26 = vld [vmem:[#allocation6 + $0x54] ss:$8 sps:$4 sm:$0xff]   ;;  %v2899_v27 = vld [vmem:[#allocation6 + $0x284] ss:$8 sps:$4 sm:$0xff]   ;;  %v2931_v28 = vld [vmem:[#allocation6 + $0x50] ss:$8 sps:$4 sm:$0xff]  }
  0x89   :  { %1656 = vmatpush1.bf16.msra.mxu0 %v2881_v5  ;;  %1549 = vmatprep.subr.bf16.mxu1 %v2909_v15  ;;  %v2902_v29 = vld [vmem:[#allocation6 + $0x280] ss:$8 sps:$4 sm:$0xff]   ;;  %v2933_v30 = vld [vmem:[#allocation6 + $0x64] ss:$8 sps:$4 sm:$0xff]   ;;  %v2905_v31 = vld [vmem:[#allocation6 + $0x294] ss:$8 sps:$4 sm:$0xff]  }
  0x8a   :  { %1657 = vmatprep.subr.bf16.mxu0 %v2882_v6  ;;  %v2937_v32 = vld [vmem:[#allocation6 + $0x60] ss:$8 sps:$4 sm:$0xff]   ;;  %v2949_v33 = vld [vmem:[#allocation3 + $0x14] ss:$52 sps:$4 sm:$0xff]   ;;  %v2939_v35 = vld [vmem:[#allocation6 + $0x74] ss:$8 sps:$4 sm:$0xff]  }
  0x8b   :  { %v2908_v34 = vld [vmem:[#allocation6 + $0x290] ss:$8 sps:$4 sm:$0xff]   ;;  %v2911_v36 = vld [vmem:[#allocation6 + $0x2a4] ss:$8 sps:$4 sm:$0xff]   ;;  %1683 = vmatprep.mubr.bf16.mxu0 %v2949_v33  ;;  %v2914_v37 = vld [vmem:[#allocation6 + $0x2a0] ss:$8 sps:$4 sm:$0xff]  }
  0x8c   :  { %1550 = vmatpush1.bf16.msra.mxu1 %v2913_v17  ;;  %v2943_v38 = vld [vmem:[#allocation6 + $0x70] ss:$8 sps:$4 sm:$0xff]   ;;  %v2945_v39 = vld [vmem:[#allocation6 + $0x84] ss:$8 sps:$4 sm:$0xff]   ;;  %v2917_v40 = vld [vmem:[#allocation6 + $0x2b4] ss:$8 sps:$4 sm:$0xff]  }
  0x8d   :  { %1658 = vmatpush1.bf16.msra.mxu0 %v2884_v7  ;;  %1551 = vmatprep.subr.bf16.mxu1 %v2915_v18  ;;  %v2953_v41 = vld [vmem:[#allocation6 + $0x80] ss:$8 sps:$4 sm:$0xff]   ;;  %v2920_v42 = vld [vmem:[#allocation6 + $0x2b0] ss:$8 sps:$4 sm:$0xff]   ;;  %v2954_v43 = vld [vmem:[#allocation6 + $0x94] ss:$8 sps:$4 sm:$0xff]  }
  0x8e   :  { %1659 = vmatprep.subr.bf16.mxu0 %v2885_v9  ;;  %v2923_v44 = vld [vmem:[#allocation6 + $0x2c4] ss:$8 sps:$4 sm:$0xff]   ;;  %v2926_v45 = vld [vmem:[#allocation6 + $0x2c0] ss:$8 sps:$4 sm:$0xff]   ;;  %v2959_v46 = vld [vmem:[#allocation6 + $0x90] ss:$8 sps:$4 sm:$0xff]  }
  0x8f   :  { %v2960_v47 = vld [vmem:[#allocation6 + $0xa4] ss:$8 sps:$4 sm:$0xff]   ;;  %v2929_v48 = vld [vmem:[#allocation6 + $0x2d4] ss:$8 sps:$4 sm:$0xff]   ;;  %v2965_v49 = vld [vmem:[#allocation6 + $0xa0] ss:$8 sps:$4 sm:$0xff]  }
  0x90   :  { %1552 = vmatpush1.bf16.msra.mxu1 %v2919_v20  ;;  %v2932_v50 = vld [vmem:[#allocation6 + $0x2d0] ss:$8 sps:$4 sm:$0xff]   ;;  %v2966_v51 = vld [vmem:[#allocation6 + $0xb4] ss:$8 sps:$4 sm:$0xff]   ;;  %v2935_v52 = vld [vmem:[#allocation6 + $0x2e4] ss:$8 sps:$4 sm:$0xff]  }
  0x91   :  { %1660 = vmatpush1.bf16.msra.mxu0 %v2887_v12  ;;  %1553 = vmatprep.subr.bf16.mxu1 %v2921_v22  ;;  %v2938_v53 = vld [vmem:[#allocation6 + $0x2e0] ss:$8 sps:$4 sm:$0xff]   ;;  %v2971_v54 = vld [vmem:[#allocation6 + $0xb0] ss:$8 sps:$4 sm:$0xff]   ;;  %v2972_v55 = vld [vmem:[#allocation6 + $0xc4] ss:$8 sps:$4 sm:$0xff]  }
  0x92   :  { %1661 = vmatprep.subr.bf16.mxu0 %v2888_v13  ;;  %v2998_v56 = vld [vmem:[#allocation3 + $0x4] ss:$52 sps:$4 sm:$0xff]   ;;  %v2944_v59 = vld [vmem:[#allocation6 + $0x2f0] ss:$8 sps:$4 sm:$0xff]   ;;  %v2952_v61 = vld [vmem:[#allocation6 + $0x304] ss:$8 sps:$4 sm:$0xff]  }
  0x93   :  { %v2941_v57 = vld [vmem:[#allocation6 + $0x2f4] ss:$8 sps:$4 sm:$0xff]   ;;  %1577 = vmatprep.mubr.bf16.mxu1 %v2998_v56  ;;  %v2977_v58 = vld [vmem:[#allocation6 + $0xc0] ss:$8 sps:$4 sm:$0xff]   ;;  %v2983_v63 = vld [vmem:[#allocation6 + $0xd0] ss:$8 sps:$4 sm:$0xff]  }
  0x94   :  { %1554 = vmatpush1.bf16.msra.mxu1 %v2925_v25  ;;  %v2978_v60 = vld [vmem:[#allocation6 + $0xd4] ss:$8 sps:$4 sm:$0xff]   ;;  %v2950_v0 = vld [vmem:[#allocation6 + $0x300] ss:$8 sps:$4 sm:$0xff]   ;;  %v2984_v1 = vld [vmem:[#allocation6 + $0xe4] ss:$8 sps:$4 sm:$0xff]  }
  0x95   :  { %1662 = vmatpush1.bf16.msra.mxu0 %v2890_v16  ;;  %1555 = vmatprep.subr.bf16.mxu1 %v2927_v26  ;;  %v2947_v62 = vld [vmem:[#allocation3 + $0x10] ss:$52 sps:$4 sm:$0xff]   ;;  %v2956_v4 = vld [vmem:[#allocation6 + $0x310] ss:$8 sps:$4 sm:$0xff]   ;;  %v2964_v6 = vld [vmem:[#allocation6 + $0x324] ss:$8 sps:$4 sm:$0xff]  }
  0x96   :  { %1663 = vmatprep.subr.bf16.mxu0 %v2891_v19  ;;  %v2958_v2 = vld [vmem:[#allocation6 + $0x314] ss:$8 sps:$4 sm:$0xff]   ;;  %v2989_v3 = vld [vmem:[#allocation6 + $0xe0] ss:$8 sps:$4 sm:$0xff]   ;;  %v2995_v8 = vld [vmem:[#allocation6 + $0xf0] ss:$8 sps:$4 sm:$0xff]  }
  0x97   :  { %v2990_v5 = vld [vmem:[#allocation6 + $0xf4] ss:$8 sps:$4 sm:$0xff]   ;;  %v2962_v7 = vld [vmem:[#allocation6 + $0x320] ss:$8 sps:$4 sm:$0xff]   ;;  %v3001_v10 = vld [vmem:[#allocation6 + $0x104] ss:$8 sps:$4 sm:$0xff]  }
  0x98   :  { %1556 = vmatpush1.bf16.msra.mxu1 %v2931_v28  ;;  %v2970_v9 = vld [vmem:[#allocation6 + $0x334] ss:$8 sps:$4 sm:$0xff]   ;;  %v2996_v11 = vld [vmem:[#allocation3] ss:$52 sps:$4 sm:$0xff]   ;;  %v2999_v12 = vld [vmem:[#allocation6 + $0x100] ss:$8 sps:$4 sm:$0xff]  }
  0x99   :  { %1664 = vmatpush1.bf16.msra.mxu0 %v2893_v21  ;;  %1557 = vmatprep.subr.bf16.mxu1 %v2933_v30  ;;  %v3038_v13 = vld [vmem:[#allocation3 + $0x7c] ss:$52 sps:$4 sm:$0xff]   ;;  %v2968_v14 = vld [vmem:[#allocation6 + $0x330] ss:$8 sps:$4 sm:$0xff]   ;;  %v3007_v15 = vld [vmem:[#allocation6 + $0x114] ss:$8 sps:$4 sm:$0xff]  }
  0x9a   :  { %1665 = vmatprep.subr.bf16.mxu0 %v2894_v23  ;;  %v3043_v16 = vld [vmem:[#allocation3 + $0x78] ss:$52 sps:$4 sm:$0xff]   ;;  %v2976_v17 = vld [vmem:[#allocation6 + $0x344] ss:$8 sps:$4 sm:$0xff]   ;;  %v3005_v18 = vld [vmem:[#allocation6 + $0x110] ss:$8 sps:$4 sm:$0xff]  }
  0x9b   :  { %v2974_v19 = vld [vmem:[#allocation6 + $0x340] ss:$8 sps:$4 sm:$0xff]   ;;  %v3013_v20 = vld [vmem:[#allocation6 + $0x124] ss:$8 sps:$4 sm:$0xff]   ;;  %v2982_v21 = vld [vmem:[#allocation6 + $0x354] ss:$8 sps:$4 sm:$0xff]  }
  0x9c   :  { %1558 = vmatpush1.bf16.msra.mxu1 %v2937_v32  ;;  %v3055_v22 = vld [vmem:[#allocation3 + $0x1c] ss:$52 sps:$4 sm:$0xff]   ;;  %v3019_v25 = vld [vmem:[#allocation6 + $0x134] ss:$8 sps:$4 sm:$0xff]   ;;  %v2992_v32 = vld [vmem:[#allocation6 + $0x370] ss:$8 sps:$4 sm:$0xff]  }
  0x9d   :  { %1666 = vmatpush1.bf16.msra.mxu0 %v2896_v24  ;;  %1559 = vmatprep.subr.bf16.mxu1 %v2939_v35  ;;  %v3011_v23 = vld [vmem:[#allocation6 + $0x120] ss:$8 sps:$4 sm:$0xff]   ;;  %v2980_v24 = vld [vmem:[#allocation6 + $0x350] ss:$8 sps:$4 sm:$0xff]   ;;  %v2988_v26 = vld [vmem:[#allocation6 + $0x364] ss:$8 sps:$4 sm:$0xff]  }
  0x9e   :  { %1667 = vmatprep.subr.bf16.mxu0 %v2899_v27  ;;  %v3017_v27 = vld [vmem:[#allocation6 + $0x130] ss:$8 sps:$4 sm:$0xff]   ;;  %v2986_v28 = vld [vmem:[#allocation6 + $0x360] ss:$8 sps:$4 sm:$0xff]   ;;  %v2994_v30 = vld [vmem:[#allocation6 + $0x374] ss:$8 sps:$4 sm:$0xff]  }
  0x9f   :  { %v3031_v33 = vld [vmem:[#allocation6 + $0x154] ss:$8 sps:$4 sm:$0xff]   ;;  %v3002_v35 = vld [vmem:[#allocation6 + $0x380] ss:$8 sps:$4 sm:$0xff]   ;;  %v3067_v56 = vld [vmem:[#allocation6 + $0x1a4] ss:$8 sps:$4 sm:$0xff]  }
  0xa0   :  { %1560 = vmatpush1.bf16.msra.mxu1 %v2943_v38  ;;  %v3037_v38 = vld [vmem:[#allocation6 + $0x164] ss:$8 sps:$4 sm:$0xff]   ;;  %s3503_s6 = smov [#allocation15]  }
  0xa1   :  { %1668 = vmatpush1.bf16.msra.mxu0 %v2902_v29  ;;  %1561 = vmatprep.subr.bf16.mxu1 %v2945_v39  ;;  %v3025_v29 = vld [vmem:[#allocation6 + $0x144] ss:$8 sps:$4 sm:$0xff]   ;;  %v3089_v39 = vld [vmem:[#allocation3 + $0x6c] ss:$52 sps:$4 sm:$0xff]   ;;  %s2484_s19 = sshll.u32 %s3503_s6, 4  ;;  %s2485_s19 = int_to_ptr.vmem [resolvable:$true] %s2484_s19 }
  0xa2   :  { %1669 = vmatprep.subr.bf16.mxu0 %v2905_v31  ;;  %v3023_v31 = vld [vmem:[#allocation6 + $0x140] ss:$8 sps:$4 sm:$0xff]   ;;  %s3457_s0 = scalar_lea.vmem %s2485_s19, 512  ;;  %p3462_p1 = scmp.lt.s32.totalorder %s2485_s19, %s2485_s19 }
  0xa3   :  { %p3458_p0 = scmp.ne.s32.totalorder %s2485_s19, %s3457_s0  ;;  %p3463_p2 = scmp.lt.s32.totalorder %s3457_s0, %s3457_s0 }
  0xa4   :  { %1562 = vmatpush1.bf16.msra.mxu1 %v2953_v41  ;;  %v3035_v41 = vld [vmem:[#allocation6 + $0x160] ss:$8 sps:$4 sm:$0xff]  }
  0xa5   :  { %1670 = vmatpush1.bf16.msra.mxu0 %v2908_v34  ;;  %1563 = vmatprep.subr.bf16.mxu1 %v2954_v43  ;;  %v3004_v34 = vld [vmem:[#allocation6 + $0x384] ss:$8 sps:$4 sm:$0xff]   ;;  %v3046_v43 = vld [vmem:[#allocation6 + $0x174] ss:$8 sps:$4 sm:$0xff]   ;;  %p3464_p3 = por %p3463_p2, %p3462_p1 }
  0xa6   :  { %1671 = vmatprep.subr.bf16.mxu0 %v2911_v36  ;;  %v3029_v36 = vld [vmem:[#allocation6 + $0x150] ss:$8 sps:$4 sm:$0xff]  }
  0xa7   :  { %p3465_p4 = pnand %p3464_p3, %p3458_p0 }
  0xa8   :  { %1564 = vmatpush1.bf16.msra.mxu1 %v2959_v46  ;;  %v3044_v46 = vld [vmem:[#allocation6 + $0x170] ss:$8 sps:$4 sm:$0xff]  }
  0xa9   :  { %1672 = vmatpush1.bf16.msra.mxu0 %v2914_v37  ;;  %1565 = vmatprep.subr.bf16.mxu1 %v2960_v47  ;;  %v3010_v37 = vld [vmem:[#allocation6 + $0x394] ss:$8 sps:$4 sm:$0xff]   ;;  %v3052_v47 = vld [vmem:[#allocation6 + $0x184] ss:$8 sps:$4 sm:$0xff]  }
  0xaa   :  { %1673 = vmatprep.subr.bf16.mxu0 %v2917_v40  ;;  %v3091_v40 = vld [vmem:[#allocation3 + $0x68] ss:$52 sps:$4 sm:$0xff]  }
  0xac   :  { %1566 = vmatpush1.bf16.msra.mxu1 %v2965_v49  ;;  %v3022_v49 = vld [vmem:[#allocation6 + $0x3b4] ss:$8 sps:$4 sm:$0xff]  }
  0xad   :  { %1674 = vmatpush1.bf16.msra.mxu0 %v2920_v42  ;;  %1567 = vmatprep.subr.bf16.mxu1 %v2966_v51  ;;  %v3008_v42 = vld [vmem:[#allocation6 + $0x390] ss:$8 sps:$4 sm:$0xff]  }
  0xae   :  { %1675 = vmatprep.subr.bf16.mxu0 %v2923_v44  ;;  %v3016_v44 = vld [vmem:[#allocation6 + $0x3a4] ss:$8 sps:$4 sm:$0xff]   ;;  %v3020_v51 = vld [vmem:[#allocation6 + $0x3b0] ss:$8 sps:$4 sm:$0xff]  }
  0xb0   :  { %1568 = vmatpush1.bf16.msra.mxu1 %v2971_v54  ;;  %v3059_v54 = vld [vmem:[#allocation6 + $0x190] ss:$8 sps:$4 sm:$0xff]  }
  0xb1   :  { %1676 = vmatpush1.bf16.msra.mxu0 %v2926_v45  ;;  %1569 = vmatprep.subr.bf16.mxu1 %v2972_v55  ;;  %v3014_v45 = vld [vmem:[#allocation6 + $0x3a0] ss:$8 sps:$4 sm:$0xff]  }
  0xb2   :  { %1677 = vmatprep.subr.bf16.mxu0 %v2929_v48  ;;  %v3106_v48 = vld [vmem:[#allocation3 + $0xc] ss:$52 sps:$4 sm:$0xff]   ;;  %v3026_v55 = vld [vmem:[#allocation6 + $0x3c0] ss:$8 sps:$4 sm:$0xff]  }
  0xb4   :  { %1570 = vmatpush1.bf16.msra.mxu1 %v2977_v58  ;;  %v3065_v58 = vld [vmem:[#allocation6 + $0x1a0] ss:$8 sps:$4 sm:$0xff]  }
  0xb5   :  { %1678 = vmatpush1.bf16.msra.mxu0 %v2932_v50  ;;  %1571 = vmatprep.subr.bf16.mxu1 %v2978_v60  ;;  %v3050_v50 = vld [vmem:[#allocation6 + $0x180] ss:$8 sps:$4 sm:$0xff]   ;;  %v3073_v60 = vld [vmem:[#allocation6 + $0x1b4] ss:$8 sps:$4 sm:$0xff]  }
  0xb6   :  { %1679 = vmatprep.subr.bf16.mxu0 %v2935_v52  ;;  %v3061_v52 = vld [vmem:[#allocation6 + $0x194] ss:$8 sps:$4 sm:$0xff]  }
  0xb8   :  { %1572 = vmatpush1.bf16.msra.mxu1 %v2983_v63  ;;  %v3040_v63 = vld [vmem:[#allocation6 + $0x3e0] ss:$8 sps:$4 sm:$0xff]  }
  0xb9   :  { %1680 = vmatpush1.bf16.msra.mxu0 %v2938_v53  ;;  %1573 = vmatprep.subr.bf16.mxu1 %v2984_v1  ;;  %v3028_v53 = vld [vmem:[#allocation6 + $0x3c4] ss:$8 sps:$4 sm:$0xff]   ;;  %v3049_v1 = vld [vmem:[#allocation6 + $0x3f4] ss:$8 sps:$4 sm:$0xff]  }
  0xba   :  { %1681 = vmatprep.subr.bf16.mxu0 %v2941_v57  ;;  %v3034_v57 = vld [vmem:[#allocation6 + $0x3d4] ss:$8 sps:$4 sm:$0xff]  }
  0xbc   :  { %1574 = vmatpush1.bf16.msra.mxu1 %v2989_v3  ;;  %v3047_v3 = vld [vmem:[#allocation6 + $0x3f0] ss:$8 sps:$4 sm:$0xff]  }
  0xbd   :  { %1682 = vmatpush1.bf16.msra.mxu0 %v2944_v59  ;;  %1575 = vmatprep.subr.bf16.mxu1 %v2990_v5  ;;  %v3032_v59 = vld [vmem:[#allocation6 + $0x3d0] ss:$8 sps:$4 sm:$0xff]   ;;  %v3058_v5 = vld [vmem:[#allocation6 + $0x404] ss:$8 sps:$4 sm:$0xff]  }
  0xbe   :  { %1704 = vmatprep.subr.bf16.mxu0 %v2952_v61  ;;  %v3042_v61 = vld [vmem:[#allocation6 + $0x3e4] ss:$8 sps:$4 sm:$0xff]  }
  0xc0   :  { %1684 = vmatmul.mubr.bf16.vlgmr.msra.gmra.mrb[0].mxu0 %v2947_v62  ;;  %1576 = vmatpush1.bf16.msra.mxu1 %v2995_v8  ;;  %v3071_v62 = vld [vmem:[#allocation6 + $0x1b0] ss:$8 sps:$4 sm:$0xff]  }
  0xc1   :  { %1705 = vmatpush1.bf16.msra.mxu0 %v2950_v0  ;;  %1598 = vmatprep.subr.bf16.mxu1 %v3001_v10  ;;  %v3079_v0 = vld [vmem:[#allocation6 + $0x1c4] ss:$8 sps:$4 sm:$0xff]   ;;  %v3083_v8 = vld [vmem:[#allocation6 + $0x1d0] ss:$8 sps:$4 sm:$0xff]  }
  0xc2   :  { %1706 = vmatprep.subr.bf16.mxu0 %v2958_v2  ;;  %1693 = vmatprep.mubr.bf16.mxu0 %v3038_v13  ;;  %v3077_v2 = vld [vmem:[#allocation6 + $0x1c0] ss:$8 sps:$4 sm:$0xff]   ;;  %v3094_v10 = vld [vmem:[#allocation6 + $0x1e4] ss:$8 sps:$4 sm:$0xff]   ;;  %v3062_v13 = vld [vmem:[#allocation6 + $0x410] ss:$8 sps:$4 sm:$0xff]  }
  0xc3   :  { %1578 = vmatmul.mubr.bf16.vlgmr.msra.gmra.mrb[0].mxu1 %v2996_v11  ;;  %v3125_v11 = vld [vmem:[#allocation3 + $0x84] ss:$52 sps:$4 sm:$0xff]  }
  0xc4   :  { %1599 = vmatpush1.bf16.msra.mxu1 %v2999_v12  ;;  %1587 = vmatprep.mubr.bf16.mxu1 %v3089_v39  ;;  %v3092_v12 = vld [vmem:[#allocation6 + $0x1e0] ss:$8 sps:$4 sm:$0xff]  }
  0xc5   :  { %1707 = vmatpush1.bf16.msra.mxu0 %v2956_v4  ;;  %1600 = vmatprep.subr.bf16.mxu1 %v3007_v15  ;;  %v3085_v4 = vld [vmem:[#allocation6 + $0x1d4] ss:$8 sps:$4 sm:$0xff]   ;;  %v3070_v15 = vld [vmem:[#allocation6 + $0x424] ss:$8 sps:$4 sm:$0xff]   ;;  %v3095_v39 = vld [vmem:[#allocation6 + $0x460] ss:$8 sps:$4 sm:$0xff]  }
  0xc6   :  { %1708 = vmatprep.subr.bf16.mxu0 %v2964_v6  ;;  %v3053_v6 = vld [vmem:[#allocation3 + $0x18] ss:$52 sps:$4 sm:$0xff]  }
  0xc8   :  { %1694 = vmatmul.mubr.bf16.gmra.mrb[4].mxu0 %v3043_v16  ;;  %1601 = vmatpush1.bf16.msra.mxu1 %v3005_v18  ;;  %v3068_v16 = vld [vmem:[#allocation6 + $0x420] ss:$8 sps:$4 sm:$0xff]   ;;  %v3130_v18 = vld [vmem:[#allocation3 + $0x80] ss:$52 sps:$4 sm:$0xff]  }
  0xc9   :  { %1709 = vmatpush1.bf16.msra.mxu0 %v2962_v7  ;;  %1602 = vmatprep.subr.bf16.mxu1 %v3013_v20  ;;  %v3056_v7 = vld [vmem:[#allocation6 + $0x400] ss:$8 sps:$4 sm:$0xff]  }
  0xca   :  { %1710 = vmatprep.subr.bf16.mxu0 %v2970_v9  ;;  %1736 = vmatprep.mubr.bf16.mxu0 %v3055_v22  ;;  %v3064_v9 = vld [vmem:[#allocation6 + $0x414] ss:$8 sps:$4 sm:$0xff]   ;;  %v3104_v22 = vld [vmem:[#allocation3 + $0x8] ss:$52 sps:$4 sm:$0xff]  }
  0xcb   :  { %1588 = vmatmul.mubr.bf16.gmra.mrb[4].mxu1 %v3091_v40  ;;  %v3136_v20 = vld [vmem:[#allocation3 + $0x24] ss:$52 sps:$4 sm:$0xff]   ;;  %v3190_v40 = vld [vmem:[#allocation6 + $0x644] ss:$8 sps:$4 sm:$0xff]  }
  0xcc   :  { %1603 = vmatpush1.bf16.msra.mxu1 %v3011_v23  ;;  %1630 = vmatprep.mubr.bf16.mxu1 %v3106_v48  ;;  %v3155_v23 = vld [vmem:[#allocation3 + $0x74] ss:$52 sps:$4 sm:$0xff]  }
  0xcd   :  { %1711 = vmatpush1.bf16.msra.mxu0 %v2968_v14  ;;  %1604 = vmatprep.subr.bf16.mxu1 %v3019_v25  ;;  %v3100_v14 = vld [vmem:[#allocation6 + $0x1f4] ss:$8 sps:$4 sm:$0xff]   ;;  %v3074_v25 = vld [vmem:[#allocation6 + $0x430] ss:$8 sps:$4 sm:$0xff]   ;;  %v3204_v48 = vld [vmem:[#allocation6 + $0x664] ss:$8 sps:$4 sm:$0xff]  }
  0xce   :  { %1712 = vmatprep.subr.bf16.mxu0 %v2976_v17  ;;  %v3098_v17 = vld [vmem:[#allocation6 + $0x1f0] ss:$8 sps:$4 sm:$0xff]  }
  0xd0   :  { %1605 = vmatpush1.bf16.msra.mxu1 %v3017_v27  ;;  %v3082_v27 = vld [vmem:[#allocation6 + $0x444] ss:$8 sps:$4 sm:$0xff]  }
  0xd1   :  { %1713 = vmatpush1.bf16.msra.mxu0 %v2974_v19  ;;  %1606 = vmatprep.subr.bf16.mxu1 %v3025_v29  ;;  %v3076_v19 = vld [vmem:[#allocation6 + $0x434] ss:$8 sps:$4 sm:$0xff]   ;;  %v3080_v29 = vld [vmem:[#allocation6 + $0x440] ss:$8 sps:$4 sm:$0xff]  }
  0xd2   :  { %1714 = vmatprep.subr.bf16.mxu0 %v2982_v21  ;;  %v3166_v21 = vld [vmem:[#allocation6 + $0x604] ss:$8 sps:$4 sm:$0xff]  }
  0xd4   :  { %1607 = vmatpush1.bf16.msra.mxu1 %v3023_v31  ;;  %v3088_v31 = vld [vmem:[#allocation6 + $0x454] ss:$8 sps:$4 sm:$0xff]  }
  0xd5   :  { %1715 = vmatpush1.bf16.msra.mxu0 %v2980_v24  ;;  %1608 = vmatprep.subr.bf16.mxu1 %v3031_v33  ;;  %v3164_v24 = vld [vmem:[#allocation6 + $0x600] ss:$8 sps:$4 sm:$0xff]  }
  0xd6   :  { %1716 = vmatprep.subr.bf16.mxu0 %v2988_v26  ;;  %v3172_v26 = vld [vmem:[#allocation6 + $0x614] ss:$8 sps:$4 sm:$0xff]   ;;  %v3176_v33 = vld [vmem:[#allocation6 + $0x620] ss:$8 sps:$4 sm:$0xff]  }
  0xd8   :  { %1609 = vmatpush1.bf16.msra.mxu1 %v3029_v36  ;;  %v3097_v36 = vld [vmem:[#allocation6 + $0x464] ss:$8 sps:$4 sm:$0xff]  }
  0xd9   :  { %1717 = vmatpush1.bf16.msra.mxu0 %v2986_v28  ;;  %1610 = vmatprep.subr.bf16.mxu1 %v3037_v38  ;;  %v3170_v28 = vld [vmem:[#allocation6 + $0x610] ss:$8 sps:$4 sm:$0xff]   ;;  %v3502_v38 = vmov 0  }
  0xda   :  { %1718 = vmatprep.subr.bf16.mxu0 %v2994_v30  ;;  %v3178_v30 = vld [vmem:[#allocation6 + $0x624] ss:$8 sps:$4 sm:$0xff]  }
  0xdc   :  { %1611 = vmatpush1.bf16.msra.mxu1 %v3035_v41  ;;  %v3103_v41 = vld [vmem:[#allocation6 + $0x474] ss:$8 sps:$4 sm:$0xff]  }
  0xdd   :  { %1719 = vmatpush1.bf16.msra.mxu0 %v2992_v32  ;;  %1612 = vmatprep.subr.bf16.mxu1 %v3046_v43  ;;  %v3157_v32 = vld [vmem:[#allocation3 + $0x70] ss:$52 sps:$4 sm:$0xff]  }
  0xde   :  { %1720 = vmatprep.subr.bf16.mxu0 %v3004_v34  ;;  %v3086_v34 = vld [vmem:[#allocation6 + $0x450] ss:$8 sps:$4 sm:$0xff]   ;;  %v3188_v43 = vld [vmem:[#allocation6 + $0x640] ss:$8 sps:$4 sm:$0xff]  }
  0xe0   :  { %1613 = vmatpush1.bf16.msra.mxu1 %v3044_v46  ;;  %v3194_v46 = vld [vmem:[#allocation6 + $0x650] ss:$8 sps:$4 sm:$0xff]  }
  0xe1   :  { %1721 = vmatpush1.bf16.msra.mxu0 %v3002_v35  ;;  %1614 = vmatprep.subr.bf16.mxu1 %v3052_v47  ;;  %v3184_v35 = vld [vmem:[#allocation6 + $0x634] ss:$8 sps:$4 sm:$0xff]   ;;  %v3107_v47 = vld [vmem:[#allocation6 + $0x480] ss:$8 sps:$4 sm:$0xff]  }
  0xe2   :  { %1722 = vmatprep.subr.bf16.mxu0 %v3010_v37  ;;  %v3182_v37 = vld [vmem:[#allocation6 + $0x630] ss:$8 sps:$4 sm:$0xff]  }
  0xe4   :  { %1615 = vmatpush1.bf16.msra.mxu1 %v3050_v50  ;;  %v3202_v50 = vld [vmem:[#allocation6 + $0x660] ss:$8 sps:$4 sm:$0xff]  }
  0xe5   :  { %1723 = vmatpush1.bf16.msra.mxu0 %v3008_v42  ;;  %1616 = vmatprep.subr.bf16.mxu1 %v3061_v52  ;;  %v3101_v42 = vld [vmem:[#allocation6 + $0x470] ss:$8 sps:$4 sm:$0xff]   ;;  %v3211_v52 = vld [vmem:[#allocation6 + $0x674] ss:$8 sps:$4 sm:$0xff]  }
  0xe6   :  { %1724 = vmatprep.subr.bf16.mxu0 %v3016_v44  ;;  %v3196_v44 = vld [vmem:[#allocation6 + $0x654] ss:$8 sps:$4 sm:$0xff]  }
  0xe8   :  { %1617 = vmatpush1.bf16.msra.mxu1 %v3059_v54  ;;  %v3209_v54 = vld [vmem:[#allocation6 + $0x670] ss:$8 sps:$4 sm:$0xff]  }
  0xe9   :  { %1725 = vmatpush1.bf16.msra.mxu0 %v3014_v45  ;;  %1618 = vmatprep.subr.bf16.mxu1 %v3067_v56  ;;  %v3109_v45 = vld [vmem:[#allocation6 + $0x484] ss:$8 sps:$4 sm:$0xff]   ;;  %v3118_v56 = vld [vmem:[#allocation6 + $0x4b4] ss:$8 sps:$4 sm:$0xff]  }
  0xea   :  { %1726 = vmatprep.subr.bf16.mxu0 %v3022_v49  ;;  %v3112_v49 = vld [vmem:[#allocation6 + $0x494] ss:$8 sps:$4 sm:$0xff]  }
  0xec   :  { %1619 = vmatpush1.bf16.msra.mxu1 %v3065_v58  ;;  %v3116_v58 = vld [vmem:[#allocation6 + $0x4b0] ss:$8 sps:$4 sm:$0xff]  }
  0xed   :  { %1727 = vmatpush1.bf16.msra.mxu0 %v3020_v51  ;;  %1620 = vmatprep.subr.bf16.mxu1 %v3073_v60  ;;  %v3110_v51 = vld [vmem:[#allocation6 + $0x490] ss:$8 sps:$4 sm:$0xff]   ;;  %v3119_v60 = vld [vmem:[#allocation6 + $0x4c0] ss:$8 sps:$4 sm:$0xff]  }
  0xee   :  { %1728 = vmatprep.subr.bf16.mxu0 %v3028_v53  ;;  %v3115_v53 = vld [vmem:[#allocation6 + $0x4a4] ss:$8 sps:$4 sm:$0xff]  }
  0xf0   :  { %1621 = vmatpush1.bf16.msra.mxu1 %v3071_v62  ;;  %v3221_v62 = vld [vmem:[#allocation3 + $0x98] ss:$52 sps:$4 sm:$0xff]  }
  0xf1   :  { %1729 = vmatpush1.bf16.msra.mxu0 %v3026_v55  ;;  %1622 = vmatprep.subr.bf16.mxu1 %v3079_v0  ;;  %v3113_v55 = vld [vmem:[#allocation6 + $0x4a0] ss:$8 sps:$4 sm:$0xff]   ;;  %v3129_v0 = vld [vmem:[#allocation6 + $0x4e4] ss:$8 sps:$4 sm:$0xff]  }
  0xf2   :  { %1730 = vmatprep.subr.bf16.mxu0 %v3034_v57  ;;  %v3218_v57 = vld [vmem:[#allocation3 + $0x30] ss:$52 sps:$4 sm:$0xff]  }
  0xf4   :  { %1623 = vmatpush1.bf16.msra.mxu1 %v3077_v2  ;;  %v3133_v2 = vld [vmem:[#allocation6 + $0x4f4] ss:$8 sps:$4 sm:$0xff]  }
  0xf5   :  { %1731 = vmatpush1.bf16.msra.mxu0 %v3032_v59  ;;  %1624 = vmatprep.subr.bf16.mxu1 %v3085_v4  ;;  %v3121_v59 = vld [vmem:[#allocation6 + $0x4c4] ss:$8 sps:$4 sm:$0xff]  }
  0xf6   :  { %1732 = vmatprep.subr.bf16.mxu0 %v3042_v61  ;;  %v3124_v61 = vld [vmem:[#allocation6 + $0x4d4] ss:$8 sps:$4 sm:$0xff]   ;;  %v3139_v4 = vld [vmem:[#allocation6 + $0x504] ss:$8 sps:$4 sm:$0xff]  }
  0xf8   :  { %1625 = vmatpush1.bf16.msra.mxu1 %v3083_v8  ;;  %v3142_v8 = vld [vmem:[#allocation6 + $0x514] ss:$8 sps:$4 sm:$0xff]  }
  0xf9   :  { %1733 = vmatpush1.bf16.msra.mxu0 %v3040_v63  ;;  %1626 = vmatprep.subr.bf16.mxu1 %v3094_v10  ;;  %v3122_v63 = vld [vmem:[#allocation6 + $0x4d0] ss:$8 sps:$4 sm:$0xff]   ;;  %v3145_v10 = vld [vmem:[#allocation6 + $0x524] ss:$8 sps:$4 sm:$0xff]  }
  0xfa   :  { %1734 = vmatprep.subr.bf16.mxu0 %v3049_v1  ;;  %v3127_v1 = vld [vmem:[#allocation6 + $0x4e0] ss:$8 sps:$4 sm:$0xff]  }
  0xfc   :  { %1627 = vmatpush1.bf16.msra.mxu1 %v3092_v12  ;;  %v3143_v12 = vld [vmem:[#allocation6 + $0x520] ss:$8 sps:$4 sm:$0xff]  }
  0xfd   :  { %1735 = vmatpush1.bf16.msra.mxu0 %v3047_v3  ;;  %1628 = vmatprep.subr.bf16.mxu1 %v3100_v14  ;;  %v3131_v3 = vld [vmem:[#allocation6 + $0x4f0] ss:$8 sps:$4 sm:$0xff]   ;;  %v3148_v14 = vld [vmem:[#allocation6 + $0x534] ss:$8 sps:$4 sm:$0xff]  }
  0xfe   :  { %1757 = vmatprep.subr.bf16.mxu0 %v3058_v5  ;;  %v3134_v5 = vld [vmem:[#allocation3 + $0x20] ss:$52 sps:$4 sm:$0xff]  }
 0x100   :  { %1737 = vmatmul.mubr.bf16.vlgmr.msra.gmra.mrb[0].mxu0 %v3053_v6  ;;  %1629 = vmatpush1.bf16.msra.mxu1 %v3098_v17  ;;  %v3137_v6 = vld [vmem:[#allocation6 + $0x500] ss:$8 sps:$4 sm:$0xff]  }
 0x101   :  { %1758 = vmatpush1.bf16.msra.mxu0 %v3056_v7  ;;  %1746 = vmatprep.mubr.bf16.mxu0 %v3125_v11  ;;  %v3200_v7 = vld [vmem:[#allocation3 + $0x8c] ss:$52 sps:$4 sm:$0xff]   ;;  %v3205_v11 = vld [vmem:[#allocation3 + $0x88] ss:$52 sps:$4 sm:$0xff]   ;;  %v3149_v17 = vld [vmem:[#allocation6 + $0x540] ss:$8 sps:$4 sm:$0xff]  }
 0x102   :  { %1759 = vmatprep.subr.bf16.mxu0 %v3064_v9  ;;  %1863 = vmatprep.subr.bf16.mxu1 %v3166_v21  ;;  %v3140_v9 = vld [vmem:[#allocation6 + $0x510] ss:$8 sps:$4 sm:$0xff]   ;;  %v3158_v21 = vld [vmem:[#allocation6 + $0x560] ss:$8 sps:$4 sm:$0xff]  }
 0x103   :  { %1631 = vmatmul.mubr.bf16.vlgmr.msra.gmra.mrb[0].mxu1 %v3104_v22  ;;  %v3163_v22 = vld [vmem:[#allocation6 + $0x574] ss:$8 sps:$4 sm:$0xff]  }
 0x104   :  { %1640 = vmatprep.mubr.bf16.mxu1 %v3155_v23  ;;  %1864 = vmatpush1.bf16.msra.mxu1 %v3164_v24  ;;  %v3161_v23 = vld [vmem:[#allocation6 + $0x570] ss:$8 sps:$4 sm:$0xff]   ;;  %v3169_v24 = vld [vmem:[#allocation6 + $0x584] ss:$8 sps:$4 sm:$0xff]  }
 0x105   :  { %1760 = vmatpush1.bf16.msra.mxu0 %v3062_v13  ;;  %1865 = vmatprep.subr.bf16.mxu1 %v3172_v26  ;;  %v3217_v13 = vld [vmem:[#allocation3 + $0x2c] ss:$52 sps:$4 sm:$0xff]  }
 0x106   :  { %1761 = vmatprep.subr.bf16.mxu0 %v3070_v15  ;;  %v3146_v15 = vld [vmem:[#allocation6 + $0x530] ss:$8 sps:$4 sm:$0xff]   ;;  %v3175_v26 = vld [vmem:[#allocation6 + $0x594] ss:$8 sps:$4 sm:$0xff]  }
 0x108   :  { %1747 = vmatmul.mubr.bf16.gmra.mrb[4].mxu0 %v3130_v18  ;;  %1866 = vmatpush1.bf16.msra.mxu1 %v3170_v28  ;;  %v3154_v18 = vld [vmem:[#allocation6 + $0x554] ss:$8 sps:$4 sm:$0xff]   ;;  %v3223_v28 = vld [vmem:[#allocation9] ss:$8 sps:$4 sm:$0xff]  }
 0x109   :  { %1762 = vmatpush1.bf16.msra.mxu0 %v3068_v16  ;;  %1789 = vmatprep.mubr.bf16.mxu0 %v3136_v20  ;;  %v3151_v16 = vld [vmem:[#allocation6 + $0x544] ss:$8 sps:$4 sm:$0xff]  }
 0x10a   :  { %1763 = vmatprep.subr.bf16.mxu0 %v3076_v19  ;;  %1867 = vmatprep.subr.bf16.mxu1 %v3178_v30  ;;  %v3152_v19 = vld [vmem:[#allocation6 + $0x550] ss:$8 sps:$4 sm:$0xff]   ;;  %v3160_v20 = vld [vmem:[#allocation6 + $0x564] ss:$8 sps:$4 sm:$0xff]  }
 0x10b   :  { %1641 = vmatmul.mubr.bf16.gmra.mrb[4].mxu1 %v3157_v32  ;;  %v3181_v30 = vld [vmem:[#allocation6 + $0x5a4] ss:$8 sps:$4 sm:$0xff]   ;;  %v3226_v32 = vld [vmem:[#allocation9 + $0x10] ss:$8 sps:$4 sm:$0xff]  }
 0x10c   :  { %1868 = vmatpush1.bf16.msra.mxu1 %v3176_v33  ;;  %1895 = vmatprep.mubr.bf16.mxu1 %v3502_v38  ;;  %v3179_v33 = vld [vmem:[#allocation6 + $0x5a0] ss:$8 sps:$4 sm:$0xff]  }
 0x10d   :  { %1764 = vmatpush1.bf16.msra.mxu0 %v3074_v25  ;;  %1869 = vmatprep.subr.bf16.mxu1 %v3184_v35  ;;  %v3167_v25 = vld [vmem:[#allocation6 + $0x580] ss:$8 sps:$4 sm:$0xff]   ;;  %v3187_v35 = vld [vmem:[#allocation6 + $0x5b4] ss:$8 sps:$4 sm:$0xff]  }
 0x10e   :  { %1765 = vmatprep.subr.bf16.mxu0 %v3082_v27  ;;  %v3173_v27 = vld [vmem:[#allocation6 + $0x590] ss:$8 sps:$4 sm:$0xff]  }
 0x110   :  { %1870 = vmatpush1.bf16.msra.mxu1 %v3182_v37  ;;  %v3185_v37 = vld [vmem:[#allocation6 + $0x5b0] ss:$8 sps:$4 sm:$0xff]  }
 0x111   :  { %1766 = vmatpush1.bf16.msra.mxu0 %v3080_v29  ;;  %1871 = vmatprep.subr.bf16.mxu1 %v3190_v40  ;;  %v3225_v29 = vld [vmem:[#allocation9 + $0x4] ss:$8 sps:$4 sm:$0xff]   ;;  %v3232_v40 = vld [vmem:[#allocation9 + $0x30] ss:$8 sps:$4 sm:$0xff]  }
 0x112   :  { %1767 = vmatprep.subr.bf16.mxu0 %v3088_v31  ;;  %v3228_v31 = vld [vmem:[#allocation9 + $0x14] ss:$8 sps:$4 sm:$0xff]  }
 0x114   :  { %1872 = vmatpush1.bf16.msra.mxu1 %v3188_v43  ;;  %v3199_v43 = vld [vmem:[#allocation6 + $0x5d4] ss:$8 sps:$4 sm:$0xff]  }
 0x115   :  { %1768 = vmatpush1.bf16.msra.mxu0 %v3086_v34  ;;  %1873 = vmatprep.subr.bf16.mxu1 %v3196_v44  ;;  %v3231_v34 = vld [vmem:[#allocation9 + $0x24] ss:$8 sps:$4 sm:$0xff]   ;;  %v3235_v44 = vld [vmem:[#allocation9 + $0x40] ss:$8 sps:$4 sm:$0xff]  }
 0x116   :  { %1769 = vmatprep.subr.bf16.mxu0 %v3097_v36  ;;  %v3229_v36 = vld [vmem:[#allocation9 + $0x20] ss:$8 sps:$4 sm:$0xff]  }
 0x118   :  { %1874 = vmatpush1.bf16.msra.mxu1 %v3194_v46  ;;  %v3240_v46 = vld [vmem:[#allocation9 + $0x54] ss:$8 sps:$4 sm:$0xff]  }
 0x119   :  { %1770 = vmatpush1.bf16.msra.mxu0 %v3095_v39  ;;  %1875 = vmatprep.subr.bf16.mxu1 %v3204_v48  ;;  %v3193_v39 = vld [vmem:[#allocation6 + $0x5c4] ss:$8 sps:$4 sm:$0xff]   ;;  %v3238_v48 = vld [vmem:[#allocation9 + $0x50] ss:$8 sps:$4 sm:$0xff]  }
 0x11a   :  { %1771 = vmatprep.subr.bf16.mxu0 %v3103_v41  ;;  %v3191_v41 = vld [vmem:[#allocation6 + $0x5c0] ss:$8 sps:$4 sm:$0xff]  }
 0x11c   :  { %1876 = vmatpush1.bf16.msra.mxu1 %v3202_v50  ;;  %v3243_v50 = vld [vmem:[#allocation9 + $0x64] ss:$8 sps:$4 sm:$0xff]  }
 0x11d   :  { %1772 = vmatpush1.bf16.msra.mxu0 %v3101_v42  ;;  %1877 = vmatprep.subr.bf16.mxu1 %v3211_v52  ;;  %v3237_v42 = vld [vmem:[#allocation9 + $0x44] ss:$8 sps:$4 sm:$0xff]   ;;  %v3241_v52 = vld [vmem:[#allocation9 + $0x60] ss:$8 sps:$4 sm:$0xff]  }
 0x11e   :  { %1773 = vmatprep.subr.bf16.mxu0 %v3109_v45  ;;  %v3197_v45 = vld [vmem:[#allocation6 + $0x5d0] ss:$8 sps:$4 sm:$0xff]  }
 0x120   :  { %1878 = vmatpush1.bf16.msra.mxu1 %v3209_v54  ;;  %v3246_v54 = vld [vmem:[#allocation9 + $0x74] ss:$8 sps:$4 sm:$0xff]  }
 0x121   :  { %1774 = vmatpush1.bf16.msra.mxu0 %v3107_v47  ;;  %2179 = vmatprep.subr.bf16.mxu1 %v3225_v29  ;;  %v3208_v47 = vld [vmem:[#allocation6 + $0x5e4] ss:$8 sps:$4 sm:$0xff]  }
 0x122   :  { %1775 = vmatprep.subr.bf16.mxu0 %v3112_v49  ;;  %v3206_v49 = vld [vmem:[#allocation6 + $0x5e0] ss:$8 sps:$4 sm:$0xff]  }
 0x123   :  { %1896 = vmatmul.mubr.bf16.vlgmr.msra.gmra.mrb[8].mxu1 %v3218_v57  ;;  %v3219_v57 = vld [vmem:[#allocation3 + $0x94] ss:$52 sps:$4 sm:$0xff]  }
 0x124   :  { %1905 = vmatprep.mubr.bf16.mxu1 %v3502_v38  ;;  %2180 = vmatpush1.bf16.msra.mxu1 %v3223_v28  ;;  %v3234_v38 = vld [vmem:[#allocation9 + $0x34] ss:$8 sps:$4 sm:$0xff]   ;;  %v1945_v28 = vlaneseq }
 0x125   :  { %1776 = vmatpush1.bf16.msra.mxu0 %v3110_v51  ;;  %2181 = vmatprep.subr.bf16.mxu1 %v3228_v31  ;;  %v3214_v51 = vld [vmem:[#allocation6 + $0x5f4] ss:$8 sps:$4 sm:$0xff]   ;;  %v1943_v31 = vld [vmem:[#allocation8] sm:$0x3] }
 0x126   :  { %1777 = vmatprep.subr.bf16.mxu0 %v3115_v53  ;;  %v3212_v53 = vld [vmem:[#allocation6 + $0x5f0] ss:$8 sps:$4 sm:$0xff]   ;;  %v3635_v29 = vshrl.u32 %v1945_v28, 7 }
 0x128   :  { %2182 = vmatpush1.bf16.msra.mxu1 %v3226_v32  ;;  %v1951_v32 = vsub.s32 1, %v3635_v29 }
 0x129   :  { %1778 = vmatpush1.bf16.msra.mxu0 %v3113_v55  ;;  %2183 = vmatprep.subr.bf16.mxu1 %v3231_v34  ;;  %v3215_v55 = vld [vmem:[#allocation3 + $0x28] ss:$52 sps:$4 sm:$0xff]  }
 0x12a   :  { %1779 = vmatprep.subr.bf16.mxu0 %v3118_v56  ;;  %v3244_v56 = vld [vmem:[#allocation9 + $0x70] ss:$8 sps:$4 sm:$0xff]  }
 0x12b   :  { %1906 = vmatmul.mubr.bf16.gmra.mrb[12].mxu1 %v3221_v62  ;;  %v3250_v62 = vld [vmem:[#allocation9 + $0x90] ss:$8 sps:$4 sm:$0xff]  }
 0x12c   :  { %2184 = vmatpush1.bf16.msra.mxu1 %v3229_v36 }
 0x12d   :  { %1780 = vmatpush1.bf16.msra.mxu0 %v3116_v58  ;;  %2185 = vmatprep.subr.bf16.mxu1 %v3234_v38  ;;  %v3249_v58 = vld [vmem:[#allocation9 + $0x84] ss:$8 sps:$4 sm:$0xff]   ;;  %v1952_v38 = vrot.slane %v1943_v31, %v1951_v32 }
 0x12e   :  { %1781 = vmatprep.subr.bf16.mxu0 %v3121_v59  ;;  %v3247_v59 = vld [vmem:[#allocation9 + $0x80] ss:$8 sps:$4 sm:$0xff]  }
 0x130   :  { %2186 = vmatpush1.bf16.msra.mxu1 %v3232_v40 }
 0x131   :  { %1782 = vmatpush1.bf16.msra.mxu0 %v3119_v60  ;;  %2187 = vmatprep.subr.bf16.mxu1 %v3237_v42  ;;  %v3252_v60 = vld [vmem:[#allocation9 + $0x94] ss:$8 sps:$4 sm:$0xff]  }
 0x132   :  { %1783 = vmatprep.subr.bf16.mxu0 %v3124_v61  ;;  %v3222_v61 = vld [vmem:[#allocation3 + $0x90] ss:$52 sps:$4 sm:$0xff]  }
 0x134   :  { %2188 = vmatpush1.bf16.msra.mxu1 %v3235_v44 }
 0x135   :  { %1784 = vmatpush1.bf16.msra.mxu0 %v3122_v63  ;;  %2189 = vmatprep.subr.bf16.mxu1 %v3240_v46  ;;  %v3255_v63 = vld [vmem:[#allocation9 + $0xa4] ss:$8 sps:$4 sm:$0xff]  }
 0x136   :  { %1785 = vmatprep.subr.bf16.mxu0 %v3129_v0  ;;  %v3253_v0 = vld [vmem:[#allocation9 + $0xa0] ss:$8 sps:$4 sm:$0xff]  }
 0x138   :  { %2190 = vmatpush1.bf16.msra.mxu1 %v3238_v48 }
 0x139   :  { %1786 = vmatpush1.bf16.msra.mxu0 %v3127_v1  ;;  %2191 = vmatprep.subr.bf16.mxu1 %v3243_v50  ;;  %v3258_v1 = vld [vmem:[#allocation9 + $0xb4] ss:$8 sps:$4 sm:$0xff]  }
 0x13a   :  { %1787 = vmatprep.subr.bf16.mxu0 %v3133_v2  ;;  %v3256_v2 = vld [vmem:[#allocation9 + $0xb0] ss:$8 sps:$4 sm:$0xff]  }
 0x13c   :  { %2192 = vmatpush1.bf16.msra.mxu1 %v3241_v52 }
 0x13d   :  { %1788 = vmatpush1.bf16.msra.mxu0 %v3131_v3  ;;  %2193 = vmatprep.subr.bf16.mxu1 %v3246_v54  ;;  %v3261_v3 = vld [vmem:[#allocation9 + $0xc4] ss:$8 sps:$4 sm:$0xff]  }
 0x13e   :  { %1810 = vmatprep.subr.bf16.mxu0 %v3139_v4  ;;  %v3259_v4 = vld [vmem:[#allocation9 + $0xc0] ss:$8 sps:$4 sm:$0xff]  }
 0x140   :  { %1790 = vmatmul.mubr.bf16.vlgmr.msra.gmra.mrb[0].mxu0 %v3134_v5  ;;  %2194 = vmatpush1.bf16.msra.mxu1 %v3244_v56  ;;  %v3264_v5 = vld [vmem:[#allocation9 + $0xd4] ss:$8 sps:$4 sm:$0xff]  }
 0x141   :  { %1811 = vmatpush1.bf16.msra.mxu0 %v3137_v6  ;;  %1799 = vmatprep.mubr.bf16.mxu0 %v3200_v7  ;;  %v3262_v6 = vld [vmem:[#allocation9 + $0xd0] ss:$8 sps:$4 sm:$0xff]   ;;  %v3267_v7 = vld [vmem:[#allocation9 + $0xe4] ss:$8 sps:$4 sm:$0xff]  }
 0x142   :  { %1812 = vmatprep.subr.bf16.mxu0 %v3142_v8  ;;  %2195 = vmatprep.subr.bf16.mxu1 %v3249_v58  ;;  %v3265_v8 = vld [vmem:[#allocation9 + $0xe0] ss:$8 sps:$4 sm:$0xff]  }
 0x144   :  { %2196 = vmatpush1.bf16.msra.mxu1 %v3247_v59 }
 0x145   :  { %1813 = vmatpush1.bf16.msra.mxu0 %v3140_v9  ;;  %2197 = vmatprep.subr.bf16.mxu1 %v3252_v60  ;;  %v3270_v9 = vld [vmem:[#allocation9 + $0xf4] ss:$8 sps:$4 sm:$0xff]  }
 0x146   :  { %1814 = vmatprep.subr.bf16.mxu0 %v3145_v10  ;;  %v3268_v10 = vld [vmem:[#allocation9 + $0xf0] ss:$8 sps:$4 sm:$0xff]  }
 0x148   :  { %1800 = vmatmul.mubr.bf16.gmra.mrb[4].mxu0 %v3205_v11  ;;  %2198 = vmatpush1.bf16.msra.mxu1 %v3250_v62 }
 0x149   :  { %1815 = vmatpush1.bf16.msra.mxu0 %v3143_v12  ;;  %1842 = vmatprep.mubr.bf16.mxu0 %v3217_v13 }
 0x14a   :  { %1816 = vmatprep.subr.bf16.mxu0 %v3148_v14  ;;  %2199 = vmatprep.subr.bf16.mxu1 %v3255_v63 }
 0x14c   :  { %2200 = vmatpush1.bf16.msra.mxu1 %v3253_v0 }
 0x14d   :  { %1817 = vmatpush1.bf16.msra.mxu0 %v3146_v15  ;;  %2201 = vmatprep.subr.bf16.mxu1 %v3258_v1 }
 0x14e   :  { %1818 = vmatprep.subr.bf16.mxu0 %v3151_v16 }
 0x150   :  { %2202 = vmatpush1.bf16.msra.mxu1 %v3256_v2 }
 0x151   :  { %1819 = vmatpush1.bf16.msra.mxu0 %v3149_v17  ;;  %2203 = vmatprep.subr.bf16.mxu1 %v3261_v3  ;;  %v3272_v3 = vld [vmem:[#allocation12] sm:$0xff]  }
 0x152   :  { %1820 = vmatprep.subr.bf16.mxu0 %v3154_v18 }
 0x154   :  { %2204 = vmatpush1.bf16.msra.mxu1 %v3259_v4 }
 0x155   :  { %1821 = vmatpush1.bf16.msra.mxu0 %v3152_v19  ;;  %2205 = vmatprep.subr.bf16.mxu1 %v3264_v5  ;;  %v3271_v19 = vld [vmem:[#allocation12 + $0x40] sm:$0xff]  }
 0x156   :  { %1822 = vmatprep.subr.bf16.mxu0 %v3160_v20 }
 0x158   :  { %2206 = vmatpush1.bf16.msra.mxu1 %v3262_v6  ;;  %v3273_v6 = vld [vmem:[#allocation12 + $0x48] sm:$0xff]  }
 0x159   :  { %1823 = vmatpush1.bf16.msra.mxu0 %v3158_v21  ;;  %2207 = vmatprep.subr.bf16.mxu1 %v3267_v7 }
 0x15a   :  { %1824 = vmatprep.subr.bf16.mxu0 %v3163_v22 }
 0x15c   :  { %2208 = vmatpush1.bf16.msra.mxu1 %v3265_v8 }
 0x15d   :  { %1825 = vmatpush1.bf16.msra.mxu0 %v3161_v23  ;;  %2209 = vmatprep.subr.bf16.mxu1 %v3270_v9 }
 0x15e   :  { %1826 = vmatprep.subr.bf16.mxu0 %v3169_v24 }
 0x160   :  { %2210 = vmatpush1.bf16.msra.mxu1 %v3268_v10 }
 0x161   :  { %1827 = vmatpush1.bf16.msra.mxu0 %v3167_v25  ;;  %2782 = vmatprep.subr.bf16.mxu1 %v3271_v19  ;;  %v3276_v19 = vld [vmem:[#allocation12 + $0x10] sm:$0xff]  }
 0x162   :  { %1828 = vmatprep.subr.bf16.mxu0 %v3175_v26 }
 0x165   :  { %1829 = vmatpush1.bf16.msra.mxu0 %v3173_v27 }
 0x166   :  { %1830 = vmatprep.subr.bf16.mxu0 %v3181_v30  ;;  %v1947_v30 = vsub.s32 0, %v3635_v29 }
 0x169   :  { %1831 = vmatpush1.bf16.msra.mxu0 %v3179_v33 }
 0x16a   :  { %1832 = vmatprep.subr.bf16.mxu0 %v3187_v35  ;;  %v1948_v35 = vrot.slane %v1943_v31, %v1947_v30  ;;  %v3285_v31 = vld [vmem:[#allocation12 + $0x78] sm:$0xff]  }
 0x16d   :  { %1833 = vmatpush1.bf16.msra.mxu0 %v3185_v37 }
 0x16e   :  { %1834 = vmatprep.subr.bf16.mxu0 %v3193_v39 }
 0x171   :  { %1835 = vmatpush1.bf16.msra.mxu0 %v3191_v41 }
 0x172   :  { %1836 = vmatprep.subr.bf16.mxu0 %v3199_v43 }
 0x175   :  { %1837 = vmatpush1.bf16.msra.mxu0 %v3197_v45 }
 0x176   :  { %1838 = vmatprep.subr.bf16.mxu0 %v3208_v47 }
 0x179   :  { %1839 = vmatpush1.bf16.msra.mxu0 %v3206_v49 }
 0x17a   :  { %1840 = vmatprep.subr.bf16.mxu0 %v3214_v51 }
 0x17d   :  { %1841 = vmatpush1.bf16.msra.mxu0 %v3212_v53 }
 0x180   :  { %1843 = vmatmul.mubr.bf16.vlgmr.msra.gmra.mrb[0].mxu0 %v3215_v55 }
 0x181   :  { %1852 = vmatprep.mubr.bf16.mxu0 %v3219_v57 }
 0x188   :  { %1853 = vmatmul.mubr.bf16.gmra.mrb[4].mxu0 %v3222_v61 }
 0x1d6   :  { %v1632_v11 = vpop.f32.mrb[0].mxu1 }
 0x1d7   :  { %v1634_v12 = vpop.f32.mrb[1].mxu1 }
 0x1d8   :  { %v1636_v13 = vpop.f32.mrb[2].mxu1 }
 0x1d9   :  { %v1638_v14 = vpop.f32.mrb[3].mxu1 }
 0x1de   :  { %v1642_v15 = vpop.f32.mrb[4].mxu1 }
 0x1df   :  { %v1644_v16 = vpop.f32.mrb[5].mxu1 }
 0x1e0   :  { %v1646_v17 = vpop.f32.mrb[6].mxu1 }
 0x1e1   :  { %v1648_v18 = vpop.f32.mrb[7].mxu1 }
 0x1f6   :  { %v1897_v20 = vpop.f32.mrb[8].mxu1 }
 0x1f7   :  { %v1899_v21 = vpop.f32.mrb[9].mxu1 }
 0x1f8   :  { %v1901_v22 = vpop.f32.mrb[10].mxu1 }
 0x1f9   :  { %v1903_v23 = vpop.f32.mrb[11].mxu1 }
 0x1fe   :  { %v1907_v24 = vpop.f32.mrb[12].mxu1 }
 0x1ff   :  { %v1909_v25 = vpop.f32.mrb[13].mxu1 }
 0x200   :  { %v1911_v26 = vpop.f32.mrb[14].mxu1 }
 0x201   :  { %v1913_v27 = vpop.f32.mrb[15].mxu1 }
 0x253   :  { %v1844_v33 = vpop.f32.mrb[0].mxu0 }
 0x254   :  { %v2810_v34 = vadd.f32 %v1844_v33, %v1632_v11  ;;  %v1846_v36 = vpop.f32.mrb[1].mxu0  ;;  %v3274_v11 = vld [vmem:[#allocation12 + $0x8] sm:$0xff]   ;;  %v3286_v33 = vld [vmem:[#allocation12 + $0x38] sm:$0xff]  }
 0x255   :  { %v2812_v37 = vadd.f32 %v1846_v36, %v1634_v12  ;;  %v1848_v39 = vpop.f32.mrb[2].mxu0 }
 0x256   :  { %v2811_v40 = vadd.f32 %v2810_v34, %v1897_v20  ;;  %v2814_v41 = vadd.f32 %v1848_v39, %v1636_v13  ;;  %v1850_v42 = vpop.f32.mrb[3].mxu0  ;;  %v3277_v20 = vld [vmem:[#allocation12 + $0x58] sm:$0xff]  }
 0x257   :  { %v2813_v43 = vadd.f32 %v2812_v37, %v1899_v21  ;;  %v2816_v44 = vadd.f32 %v1850_v42, %v1638_v14  ;;  %v3275_v14 = vld [vmem:[#allocation12 + $0x50] sm:$0xff]   ;;  %v3278_v21 = vld [vmem:[#allocation12 + $0x18] sm:$0xff]  }
 0x258   :  { %v1955_v45 = vadd.f32 %v2811_v40, %v1948_v35  ;;  %v2815_v46 = vadd.f32 %v2814_v41, %v1901_v22  ;;  %v3279_v22 = vld [vmem:[#allocation12 + $0x60] sm:$0xff]   ;;  %v2007_v34 = vld [vmem:[#allocation11] sm:$0x3] }
 0x259   :  { %v1956_v47 = vadd.f32 %v2813_v43, %v1952_v38  ;;  %v2817_v48 = vadd.f32 %v2816_v44, %v1903_v23  ;;  %v3280_v23 = vld [vmem:[#allocation12 + $0x20] sm:$0xff]   ;;  %v2016_v36 = vrot.slane %v2007_v34, %v1951_v32 }
 0x25a   :  { %v1957_v49 = vadd.f32 %v2815_v46, %v1948_v35  ;;  %v1963_v52 = vmax.f32 %v1955_v45, 0.0 }
 0x25b   :  { %v1958_v50 = vadd.f32 %v2817_v48, %v1952_v38  ;;  %v1854_v51 = vpop.f32.mrb[4].mxu0  ;;  %v1964_v56 = vmax.f32 %v1956_v47, 0.0 }
 0x25c   :  { %v1965_v53 = vmax.f32 %v1957_v49, 0.0  ;;  %v2818_v54 = vadd.f32 %v1854_v51, %v1642_v15  ;;  %v1856_v55 = vpop.f32.mrb[5].mxu0 }
 0x25d   :  { %v1966_v57 = vmax.f32 %v1958_v50, 0.0  ;;  %v2820_v58 = vadd.f32 %v1856_v55, %v1644_v16  ;;  %v1858_v59 = vpop.f32.mrb[6].mxu0 }
 0x25e   :  { %v1971_v60 = vpack.c.bf16 %v1965_v53, %v1963_v52  ;;  %v2819_v61 = vadd.f32 %v2818_v54, %v1907_v24  ;;  %v2822_v62 = vadd.f32 %v1858_v59, %v1646_v17  ;;  %v1860_v63 = vpop.f32.mrb[7].mxu0  ;;  %v3281_v24 = vld [vmem:[#allocation12 + $0x68] sm:$0xff]  }
 0x25f   :  { %v2821_v0 = vadd.f32 %v2820_v58, %v1909_v25  ;;  %v2824_v1 = vadd.f32 %v1860_v63, %v1648_v18  ;;  %v1972_v2 = vpack.c.bf16 %v1966_v57, %v1964_v56  ;;  %v3282_v25 = vld [vmem:[#allocation12 + $0x28] sm:$0xff]  }
 0x260   :  { %v1959_v4 = vadd.f32 %v2819_v61, %v1948_v35  ;;  %v2823_v5 = vadd.f32 %v2822_v62, %v1911_v26  ;;  %v3283_v26 = vld [vmem:[#allocation12 + $0x70] sm:$0xff]   ;;  %v3648_v62 = vand.u32 127, %v1945_v28 }
 0x261   :  { %v1960_v7 = vadd.f32 %v2821_v0, %v1952_v38  ;;  %v2825_v8 = vadd.f32 %v2824_v1, %v1913_v27  ;;  %2211 = vmatprep.mubr.bf16.mxu1 %v1972_v2  ;;  %v3284_v27 = vld [vmem:[#allocation12 + $0x30] sm:$0xff]   ;;  %v2765_v1 = vld [vmem:[#allocation14] ss:$0 sm:$0xff] }
 0x262   :  { %v1961_v9 = vadd.f32 %v2823_v5, %v1948_v35  ;;  %2212 = vmatmul.mubr.bf16.vlgmr.msra.gmra.mrb[16].mxu1 %v1971_v60  ;;  %v1967_v12 = vmax.f32 %v1959_v4, 0.0  ;;  %v2012_v35 = vrot.slane %v2007_v34, %v1947_v30  ;;  %vm2430_vm0 = vcmp.lt.s32.totalorder %v3648_v62, 8 }
 0x263   :  { %v1962_v10 = vadd.f32 %v2825_v8, %v1952_v38  ;;  %2783 = vmatpush3.bf16.msra.mxu1 %v3272_v3  ;;  %v1968_v15 = vmax.f32 %v1960_v7, 0.0 }
 0x264   :  { %v1969_v13 = vmax.f32 %v1961_v9, 0.0  ;;  %2784 = vmatprep.subr.bf16.mxu1 %v3273_v6 }
 0x265   :  { %v1970_v16 = vmax.f32 %v1962_v10, 0.0 }
 0x266   :  { %v1973_v17 = vpack.c.bf16 %v1969_v13, %v1967_v12 }
 0x267   :  { %v1974_v18 = vpack.c.bf16 %v1970_v16, %v1968_v15  ;;  %2785 = vmatpush3.bf16.msra.mxu1 %v3274_v11 }
 0x268   :  { %2786 = vmatprep.subr.bf16.mxu1 %v3275_v14 }
 0x269   :  { %2221 = vmatprep.mubr.bf16.mxu1 %v1974_v18 }
 0x26a   :  { %2222 = vmatmul.mubr.bf16.gmra.mrb[20].mxu1 %v1973_v17 }
 0x26b   :  { %2787 = vmatpush3.bf16.msra.mxu1 %v3276_v19 }
 0x26c   :  { %2788 = vmatprep.subr.bf16.mxu1 %v3277_v20 }
 0x26f   :  { %2789 = vmatpush3.bf16.msra.mxu1 %v3278_v21 }
 0x270   :  { %2790 = vmatprep.subr.bf16.mxu1 %v3279_v22 }
 0x273   :  { %2791 = vmatpush3.bf16.msra.mxu1 %v3280_v23 }
 0x274   :  { %2792 = vmatprep.subr.bf16.mxu1 %v3281_v24 }
 0x277   :  { %2793 = vmatpush3.bf16.msra.mxu1 %v3282_v25 }
 0x278   :  { %2794 = vmatprep.subr.bf16.mxu1 %v3283_v26 }
 0x27b   :  { %2795 = vmatpush3.bf16.msra.mxu1 %v3284_v27 }
 0x27c   :  { %2796 = vmatprep.subr.bf16.mxu1 %v3285_v31 }
 0x27f   :  { %2797 = vmatpush3.bf16.msra.mxu1 %v3286_v33 }
 0x335   :  { %v2213_v37 = vpop.f32.mrb[16].mxu1 }
 0x336   :  { %v2214_v38 = vadd.f32 %v2213_v37, %v2012_v35  ;;  %v2215_v39 = vpop.f32.mrb[17].mxu1 }
 0x337   :  { %v2216_v40 = vadd.f32 %v2215_v39, %v2016_v36  ;;  %v2217_v41 = vpop.f32.mrb[18].mxu1 }
 0x338   :  { %v2218_v42 = vadd.f32 %v2217_v41, %v2012_v35  ;;  %v2219_v43 = vpop.f32.mrb[19].mxu1  ;;  %v2232_v45 = vmax.f32 %v2214_v38, 0.0 }
 0x339   :  { %v2220_v44 = vadd.f32 %v2219_v43, %v2016_v36  ;;  %v2233_v47 = vmax.f32 %v2216_v40, 0.0 }
 0x33a   :  { %v2234_v46 = vmax.f32 %v2218_v42, 0.0 }
 0x33b   :  { %v2235_v48 = vmax.f32 %v2220_v44, 0.0 }
 0x33c   :  { %v2240_v49 = vpack.c.bf16 %v2234_v46, %v2232_v45 }
 0x33d   :  { %v2241_v50 = vpack.c.bf16 %v2235_v48, %v2233_v47  ;;  %v2223_v51 = vpop.f32.mrb[20].mxu1 }
 0x33e   :  { %v2224_v52 = vadd.f32 %v2223_v51, %v2012_v35  ;;  %v2225_v30 = vpop.f32.mrb[21].mxu1 }
 0x33f   :  { %v2226_v53 = vadd.f32 %v2225_v30, %v2016_v36  ;;  %v2227_v29 = vpop.f32.mrb[22].mxu1  ;;  %2411 = vmatprep.mubr.bf16.mxu1 %v2241_v50 }
 0x340   :  { %v2228_v32 = vadd.f32 %v2227_v29, %v2012_v35  ;;  %v2229_v54 = vpop.f32.mrb[23].mxu1  ;;  %2412 = vmatmul.mubr.bf16.vlgmr.msra.gmra.mrb[24].mxu1 %v2240_v49  ;;  %v2236_v56 = vmax.f32 %v2224_v52, 0.0 }
 0x341   :  { %v2230_v55 = vadd.f32 %v2229_v54, %v2016_v36  ;;  %v2237_v58 = vmax.f32 %v2226_v53, 0.0 }
 0x342   :  { %v2238_v57 = vmax.f32 %v2228_v32, 0.0 }
 0x343   :  { %v2239_v59 = vmax.f32 %v2230_v55, 0.0 }
 0x344   :  { %v2242_v60 = vpack.c.bf16 %v2238_v57, %v2236_v56 }
 0x345   :  { %v2243_v61 = vpack.c.bf16 %v2239_v59, %v2237_v58 }
 0x347   :  { %2419 = vmatprep.mubr.bf16.mxu1 %v2243_v61 }
 0x348   :  { %2420 = vmatmul.mubr.bf16.gmra.mrb[28].mxu1 %v2242_v60 }
 0x413   :  { %v2798_v63 = vpop.f32.mrb[24].mxu1 }
 0x414   :  { %v2799_v0 = vpop.f32.mrb[25].mxu1 }
 0x415   :  { %v2800_v2 = vadd.f32 %v2799_v0, %v2798_v63  ;;  %v2801_v3 = vpop.f32.mrb[26].mxu1 }
 0x416   :  { %v2802_v4 = vpop.f32.mrb[27].mxu1 }
 0x417   :  { %v2803_v5 = vadd.f32 %v2802_v4, %v2801_v3  ;;  %v2414_v6 = vadd.f32 %v2800_v2, %v2765_v1 }
 0x419   :  { %v2431_v7 = vsel %vm2430_vm0, %v2414_v6, -inf  ;;  %v2417_v8 = vadd.f32 %v2803_v5, %v2765_v1 }
 0x41a   :  { %2435 = vmax.xlane.f32.xlu0 %v2431_v7 }
 0x41b   :  { %v2804_v9 = vpop.f32.mrb[28].mxu1  ;;  %v2432_v12 = vsel %vm2430_vm0, %v2417_v8, -inf }
 0x41c   :  { %v2805_v10 = vpop.f32.mrb[29].mxu1 }
 0x41d   :  { %v2806_v11 = vadd.f32 %v2805_v10, %v2804_v9  ;;  %v2807_v28 = vpop.f32.mrb[30].mxu1 }
 0x41e   :  { %v2808_v13 = vpop.f32.mrb[31].mxu1  ;;  %2437 = vmax.xlane.f32.xlu0 %v2432_v12 }
 0x41f   :  { %v2809_v14 = vadd.f32 %v2808_v13, %v2807_v28  ;;  %v2422_v15 = vadd.f32 %v2806_v11, %v2765_v1 }
 0x421   :  { %v2433_v16 = vsel %vm2430_vm0, %v2422_v15, -inf  ;;  %v2425_v17 = vadd.f32 %v2809_v14, %v2765_v1 }
 0x422   :  { %2439 = vmax.xlane.f32.xlu1 %v2433_v16 }
 0x423   :  { %v2434_v18 = vsel %vm2430_vm0, %v2425_v17, -inf }
 0x426   :  { %2441 = vmax.xlane.f32.xlu1 %v2434_v18 }
 0x4a7   :  { %v2436_v19 = vpop.xlane.xlu0 %2435 }
 0x4a8   :  { %v2443_v20 = vsub.f32 %v2431_v7, %v2436_v19 }
 0x4aa   :  { %v2447_v21 = vmul.f32 1.442695, %v2443_v20 }
 0x4ab   :  { %v2438_v22 = vpop.xlane.xlu0 %2437 }
 0x4ac   :  { %3287 = vpow2.f32 %v2447_v21  ;;  %v2444_v23 = vsub.f32 %v2432_v12, %v2438_v22 }
 0x4ae   :  { %v2449_v24 = vmul.f32 1.442695, %v2444_v23 }
 0x4af   :  { %v2440_v25 = vpop.xlane.xlu1 %2439 }
 0x4b0   :  { %3289 = vpow2.f32 %v2449_v24  ;;  %v2445_v26 = vsub.f32 %v2433_v16, %v2440_v25 }
 0x4b2   :  { %v2451_v27 = vmul.f32 1.442695, %v2445_v26 }
 0x4b3   :  { %v2442_v31 = vpop.xlane.xlu1 %2441 }
 0x4b4   :  { %3291 = vpow2.f32 %v2451_v27  ;;  %v2446_v33 = vsub.f32 %v2434_v18, %v2442_v31 }
 0x4b6   :  { %v3288_v34 = vpop.eup %3287  ;;  %v2453_v35 = vmul.f32 1.442695, %v2446_v33 }
 0x4b7   :  { %2455 = vadd.xlane.f32.xlu0 %v3288_v34 }
 0x4b8   :  { %3293 = vpow2.f32 %v2453_v35 }
 0x4ba   :  { %v3290_v36 = vpop.eup %3289 }
 0x4bb   :  { %2457 = vadd.xlane.f32.xlu1 %v3290_v36 }
 0x4be   :  { %v3292_v37 = vpop.eup %3291 }
 0x4bf   :  { %2459 = vadd.xlane.f32.xlu0 %v3292_v37 }
 0x4c2   :  { %v3294_v38 = vpop.eup %3293 }
 0x4c3   :  { %2461 = vadd.xlane.f32.xlu1 %v3294_v38 }
 0x544   :  { %v2456_v39 = vpop.xlane.xlu0 %2455 }
 0x545   :  { %3295 = vrcp.f32 %v2456_v39 }
 0x548   :  { %v2458_v40 = vpop.xlane.xlu1 %2457 }
 0x549   :  { %3297 = vrcp.f32 %v2458_v40 }
 0x54c   :  { %v2460_v41 = vpop.xlane.xlu0 %2459 }
 0x54d   :  { %3299 = vrcp.f32 %v2460_v41 }
 0x54f   :  { %v3296_v42 = vpop.eup %3295 }
 0x550   :  { %v2467_v43 = vmul.f32 %v3296_v42, %v3288_v34  ;;  %v2462_v44 = vpop.xlane.xlu1 %2461 }
 0x551   :  { %3301 = vrcp.f32 %v2462_v44 }
 0x552   :  { %v2471_v45 = vsel %vm2430_vm0, %v2467_v43, %v2414_v6 }
 0x553   :  { %v3298_v46 = vpop.eup %3297  ;;  %2475 = vst [vmem:[#allocation15] sm:$0xff] %v2471_v45 }
 0x554   :  { %v2468_v47 = vmul.f32 %v3298_v46, %v3290_v36 }
 0x556   :  { %v2472_v48 = vsel %vm2430_vm0, %v2468_v47, %v2417_v8 }
 0x557   :  { %v3300_v49 = vpop.eup %3299  ;;  %2476 = vst [vmem:[#allocation15 + $0x8] sm:$0xff] %v2472_v48 }
 0x558   :  { %v2469_v50 = vmul.f32 %v3300_v49, %v3292_v37 }
 0x55a   :  { %v2473_v51 = vsel %vm2430_vm0, %v2469_v50, %v2422_v15 }
 0x55b   :  { %v3302_v52 = vpop.eup %3301  ;;  %2477 = vst [vmem:[#allocation15 + $0x10] sm:$0xff] %v2473_v51 }
 0x55c   :  { %v2470_v30 = vmul.f32 %v3302_v52, %v3294_v38 }
 0x55e   :  { %v2474_v53 = vsel %vm2430_vm0, %v2470_v30, %v2425_v17 }
 0x55f   :  { %2478 = vst [vmem:[#allocation15 + $0x18] sm:$0xff] %v2474_v53 }
 0x560   :  { %3468 = shalt.err (!%p3465_p4)
}
 0x561   :  { %s3469_s22 = scalar_lea.hbm %s3689_s7, 512 }
 0x562   :  { %p3470_p5 = scmp.ne.s32.totalorder %s3689_s7, %s3469_s22  ;;  %p3473_p6 = scmp.lt.u32.totalorder %s3469_s22, %s3689_s7 }
 0x564   :  { %p3475_p7 = pnand %p3473_p6, %p3470_p5 }
 0x566   :  { %3478 = shalt.err (!%p3475_p7)
}
 0x567   :  { %2490 = dma.vmem_to_hbm [thread:$0]  %s2485_s19, 512, %s3689_s7, [#allocation5], %s3490_s11, %s3490_s11, %s3491_s12  }
 0x568   :  { %3487 = dma.done.wait [#allocation5], 512  }
 0x569   :  { %3488 = vsyncadd [#allocation5], 4294966784 }
 0x56a   :  { %2494 = vsyncpa [#allocation4], 1 }
 0x56b   :  { %2495 = vsyncpa [#allocation7], 1 }
 0x56c   :  { %2496 = vsyncpa [#allocation10], 1 }
 0x56d   :  { %2497 = vsyncpa [#allocation13], 1 }
 0x56e   :  { %2498 = vsyncpa [#allocation5], 1 }

</bundles_post_ra>
